<compile_context>
chip_gen: v5e
topology: v5e:2x2
jax: 0.10.0
libtpu: 0.0.40
codegen_flags: <defaults>
</compile_context>

<pallas_src>
import math

import jax
import jax.numpy as jnp
from jax.experimental import pallas as pl
from jax.experimental.pallas import tpu as pltpu


def _round_up(x, m):
    return ((x + m - 1) // m) * m


def qnetwork_kernel(x_ref, w1_ref, b1_ref, w2_ref, b2_ref, o_ref):
    # Linear(obs_dim -> 512) + ReLU + Linear(512 -> n_actions_padded).
    # bf16 operands into the MXU, f32 accumulate, f32 bias/ReLU on the VPU.
    x = x_ref[...].astype(jnp.bfloat16)  # in-kernel cast (spare VALU slot)
    h = jnp.dot(x, w1_ref[...], preferred_element_type=jnp.float32)
    h = jnp.maximum(h + b1_ref[...], 0.0)
    out = jnp.dot(h.astype(jnp.bfloat16), w2_ref[...],
                  preferred_element_type=jnp.float32)
    o_ref[...] = (out + b2_ref[...]).astype(o_ref.dtype)


def prepare_params(w1, b1, w2, b2):
    """One-time conversion of f32 params to the kernel's persistent layout.

    Weights are stored (in_features, out_features) (transpose of PyTorch's
    nn.Linear weight); biases are (1, out_features). Returns
    (w1_bf16, b1_f32, w2_bf16_padded, b2_f32_padded, n_actions).
    """
    hidden = w1.shape[1]
    n_actions = w2.shape[1]
    n_pad = _round_up(n_actions, 128)  # lane-dense output, no vst.msk

    w1_b = w1.astype(jnp.bfloat16)
    b1_f = b1.astype(jnp.float32).reshape(1, hidden)
    w2_p = jnp.zeros((hidden, n_pad), jnp.bfloat16).at[:, :n_actions].set(
        w2.astype(jnp.bfloat16))
    b2_p = jnp.zeros((1, n_pad), jnp.float32).at[:, :n_actions].set(
        b2.astype(jnp.float32).reshape(1, n_actions))
    return w1_b, b1_f, w2_p, b2_p, n_actions


_MAX_TM = 512  # rows per grid step; ~5.7 MiB VMEM at obs_dim=1024 (well in budget)


def qnetwork_forward(x, params):
    """x: (B, obs_dim) float32 -> (B, n_actions) float32.

    `params` must come from prepare_params() (persistent bf16/padded layout).
    """
    w1_b, b1_f, w2_p, b2_p, n_actions = params
    B, obs_dim = x.shape
    hidden = w1_b.shape[1]
    n_pad = w2_p.shape[1]

    # Pad rows only to the 8-sublane boundary; pick the largest tile up to 512.
    b_pad = _round_up(B, 8)
    tm = min(b_pad, _MAX_TM)
    grid = (pl.cdiv(b_pad, tm),)  # partial last tile is masked by Pallas

    x_p = x if b_pad == B else (
        jnp.zeros((b_pad, obs_dim), x.dtype).at[:B].set(x))

    # Pinned operands: constant index map + single buffer (never refilled).
    def pinned(shape):
        return pl.BlockSpec(shape, lambda i: (0,) * len(shape),
                            pipeline_mode=pl.Buffered(1))

    flops = 2 * b_pad * (obs_dim * hidden + hidden * n_pad)
    bytes_accessed = (b_pad * obs_dim * 4          # x (f32)
                      + w1_b.size * 2 + w2_p.size * 2
                      + b1_f.size * 4 + b2_p.size * 4
                      + b_pad * n_pad * 4)         # out (f32)

    out_pad = pl.pallas_call(
        qnetwork_kernel,
        out_shape=jax.ShapeDtypeStruct((b_pad, n_pad), jnp.float32),
        grid=grid,
        in_specs=[
            pl.BlockSpec((tm, obs_dim), lambda i: (i, 0)),  # x tile (f32)
            pinned((obs_dim, hidden)),                      # w1 (bf16)
            pinned((1, hidden)),                            # b1 (f32)
            pinned((hidden, n_pad)),                        # w2 (bf16, padded)
            pinned((1, n_pad)),                             # b2 (f32, padded)
        ],
        out_specs=pl.BlockSpec((tm, n_pad), lambda i: (i, 0)),
        compiler_params=pltpu.CompilerParams(
            dimension_semantics=("parallel",)),
        cost_estimate=pl.CostEstimate(
            flops=flops, transcendentals=0, bytes_accessed=bytes_accessed),
    )(x_p, w1_b, b1_f, w2_p, b2_p)

    return out_pad[:B, :n_actions]


def init_params(key, obs_dim, hidden, n_actions):
    """Deterministic init matching PyTorch nn.Linear default (uniform +-1/sqrt(fan_in))."""
    k1, k2, k3, k4 = jax.random.split(key, 4)
    bound1 = 1.0 / math.sqrt(obs_dim)
    bound2 = 1.0 / math.sqrt(hidden)
    w1 = jax.random.uniform(k1, (obs_dim, hidden), jnp.float32, -bound1, bound1)
    b1 = jax.random.uniform(k2, (1, hidden), jnp.float32, -bound1, bound1)
    w2 = jax.random.uniform(k3, (hidden, n_actions), jnp.float32, -bound2, bound2)
    b2 = jax.random.uniform(k4, (1, n_actions), jnp.float32, -bound2, bound2)
    return w1, b1, w2, b2


if __name__ == "__main__":
    # obs_space = (4, 16, 16) -> flattened obs_dim = 1024; n_actions = 6; batch = 2.
    obs_space = (4, 16, 16)
    obs_dim = int(math.prod(obs_space))
    hidden = 512
    n_actions = 6
    batch = 2

    key = jax.random.PRNGKey(0)
    kx, kp = jax.random.split(key)
    # The nn.Linear input is the flattened observation.
    x_img = jax.random.normal(kx, (batch,) + obs_space, dtype=jnp.float32)
    x = x_img.reshape(batch, obs_dim)
    w1, b1, w2, b2 = init_params(kp, obs_dim, hidden, n_actions)

    # One-time param conversion (persistent across forward calls).
    params = prepare_params(w1, b1, w2, b2)

    out = qnetwork_forward(x, params)
    out = jax.block_until_ready(out)
    assert out.shape == (batch, n_actions)

    # Pure-JAX reference along the same bf16-weight / f32-accumulate path
    # (primary correctness assertion).
    xb = x.astype(jnp.bfloat16)
    w1b = w1.astype(jnp.bfloat16)
    w2b = w2.astype(jnp.bfloat16)
    h_ref = jnp.maximum(
        jnp.dot(xb, w1b, preferred_element_type=jnp.float32) + b1, 0.0)
    ref = jnp.dot(h_ref.astype(jnp.bfloat16), w2b,
                  preferred_element_type=jnp.float32) + b2
    assert jnp.allclose(out, ref, atol=2e-2, rtol=2e-2)

    # Sanity check against full-f32 math (bf16 weight quantization error only).
    ref_f32 = jnp.maximum(x @ w1 + b1, 0.0) @ w2 + b2
    assert jnp.max(jnp.abs(out - ref_f32)) < 0.1

    print("KERNEL_OK")
</pallas_src>

<mosaic_0001>
module attributes {stable_mosaic.version = 11 : i64} {
  func.func @qnetwork_kernel(%arg0: i32, %arg1: memref<8x1024xf32, #tpu.memory_space<vmem>>, %arg2: memref<1024x512xbf16, #tpu.memory_space<vmem>>, %arg3: memref<1x512xf32, #tpu.memory_space<vmem>>, %arg4: memref<512x128xbf16, #tpu.memory_space<vmem>>, %arg5: memref<1x128xf32, #tpu.memory_space<vmem>>, %arg6: memref<8x128xf32, #tpu.memory_space<vmem>>) attributes {dimension_semantics = [#tpu.dimension_semantics<parallel>], iteration_bounds = array<i64: 1>, scalar_prefetch = 0 : i64, scratch_operands = 0 : i64, tpu.core_type = #tpu.core_type<tc>, window_params = [{transform_indices = @transform_0, window_bounds = array<i64: 8, 1024>}, {pipeline_mode = #tpu.pipeline_mode<synchronous>, transform_indices = @transform_1, window_bounds = array<i64: 1024, 512>}, {pipeline_mode = #tpu.pipeline_mode<synchronous>, transform_indices = @transform_2, window_bounds = array<i64: 1, 512>}, {pipeline_mode = #tpu.pipeline_mode<synchronous>, transform_indices = @transform_3, window_bounds = array<i64: 512, 128>}, {pipeline_mode = #tpu.pipeline_mode<synchronous>, transform_indices = @transform_4, window_bounds = array<i64: 1, 128>}, {transform_indices = @transform_5, window_bounds = array<i64: 8, 128>}]} {
    %c0 = arith.constant 0 : index
    %c0_0 = arith.constant 0 : index
    %0 = vector.load %arg1[%c0, %c0_0] : memref<8x1024xf32, #tpu.memory_space<vmem>>, vector<8x1024xf32>
    %1 = arith.truncf %0 : vector<8x1024xf32> to vector<8x1024xbf16>
    %c0_1 = arith.constant 0 : index
    %c0_2 = arith.constant 0 : index
    %2 = vector.load %arg2[%c0_1, %c0_2] : memref<1024x512xbf16, #tpu.memory_space<vmem>>, vector<1024x512xbf16>
    %cst = arith.constant dense<0.000000e+00> : vector<8x512xf32>
    %3 = tpu.matmul %1, %2, %cst {dimension_numbers = #tpu.dot_dimension_numbers<[1], [0], [0], [1], [0, 0, 1, 1], [], []>} : vector<8x1024xbf16>, vector<1024x512xbf16>, vector<8x512xf32> -> vector<8x512xf32>
    %c0_3 = arith.constant 0 : index
    %c0_4 = arith.constant 0 : index
    %4 = vector.load %arg3[%c0_3, %c0_4] : memref<1x512xf32, #tpu.memory_space<vmem>>, vector<1x512xf32>
    %5 = vector.broadcast %4 : vector<1x512xf32> to vector<8x512xf32>
    %6 = arith.addf %3, %5 : vector<8x512xf32>
    %cst_5 = arith.constant 0.000000e+00 : f32
    %7 = vector.broadcast %cst_5 : f32 to vector<8x512xf32>
    %8 = arith.maximumf %6, %7 : vector<8x512xf32>
    %9 = arith.truncf %8 : vector<8x512xf32> to vector<8x512xbf16>
    %c0_6 = arith.constant 0 : index
    %c0_7 = arith.constant 0 : index
    %10 = vector.load %arg4[%c0_6, %c0_7] : memref<512x128xbf16, #tpu.memory_space<vmem>>, vector<512x128xbf16>
    %cst_8 = arith.constant dense<0.000000e+00> : vector<8x128xf32>
    %11 = tpu.matmul %9, %10, %cst_8 {dimension_numbers = #tpu.dot_dimension_numbers<[1], [0], [0], [1], [0, 0, 1, 1], [], []>} : vector<8x512xbf16>, vector<512x128xbf16>, vector<8x128xf32> -> vector<8x128xf32>
    %c0_9 = arith.constant 0 : index
    %c0_10 = arith.constant 0 : index
    %12 = vector.load %arg5[%c0_9, %c0_10] : memref<1x128xf32, #tpu.memory_space<vmem>>, vector<1x128xf32>
    %13 = vector.broadcast %12 : vector<1x128xf32> to vector<8x128xf32>
    %14 = arith.addf %11, %13 : vector<8x128xf32>
    %c0_11 = arith.constant 0 : index
    %c0_12 = arith.constant 0 : index
    %15 = vector.load %arg6[%c0_11, %c0_12] : memref<8x128xf32, #tpu.memory_space<vmem>>, vector<8x128xf32>
    tpu.vector_store %arg6[%c0_11, %c0_12], %14 {strides = array<i32>} : memref<8x128xf32, #tpu.memory_space<vmem>>, vector<8x128xf32>,
    return
  }
  func.func @transform_0(%arg0: i32) -> (i32, i32) {
    %c0_i32 = arith.constant 0 : i32
    %c0_i32_0 = arith.constant 0 : i32
    return %arg0, %c0_i32 : i32, i32
  }
  func.func @transform_1(%arg0: i32) -> (i32, i32) {
    %c0_i32 = arith.constant 0 : i32
    %c0_i32_0 = arith.constant 0 : i32
    %c0_i32_1 = arith.constant 0 : i32
    return %c0_i32, %c0_i32_0 : i32, i32
  }
  func.func @transform_2(%arg0: i32) -> (i32, i32) {
    %c0_i32 = arith.constant 0 : i32
    %c0_i32_0 = arith.constant 0 : i32
    %c0_i32_1 = arith.constant 0 : i32
    return %c0_i32, %c0_i32_0 : i32, i32
  }
  func.func @transform_3(%arg0: i32) -> (i32, i32) {
    %c0_i32 = arith.constant 0 : i32
    %c0_i32_0 = arith.constant 0 : i32
    %c0_i32_1 = arith.constant 0 : i32
    return %c0_i32, %c0_i32_0 : i32, i32
  }
  func.func @transform_4(%arg0: i32) -> (i32, i32) {
    %c0_i32 = arith.constant 0 : i32
    %c0_i32_0 = arith.constant 0 : i32
    %c0_i32_1 = arith.constant 0 : i32
    return %c0_i32, %c0_i32_0 : i32, i32
  }
  func.func @transform_5(%arg0: i32) -> (i32, i32) {
    %c0_i32 = arith.constant 0 : i32
    %c0_i32_0 = arith.constant 0 : i32
    return %arg0, %c0_i32 : i32, i32
  }
}

</mosaic_0001>

<bundles_post_ra>
// kernel: tpu_custom_call.1
= control target key start
LH: loop header
LB: loop body
LE: loop exit
PB: predicated region body
PF: predicated region fallthrough
CT: control target
= control target key end

     0   :  { %10 = vsyncpa [#allocation3], 0  ;;  %s4105_s0 = inlined_call_operand.hbm [shape: f32[8,1024], index: 0, kind: input, shape index: {}]   ;;  %s4106_s1 = inlined_call_operand.hbm [shape: bf16[1024,512], index: 1, kind: input, shape index: {}]   ;;  %s4107_s2 = inlined_call_operand.hbm [shape: f32[1,512], index: 2, kind: input, shape index: {}]   ;;  %s4108_s3 = inlined_call_operand.hbm [shape: bf16[512,128], index: 3, kind: input, shape index: {}]   ;;  %s4109_s4 = inlined_call_operand.vmem [shape: f32[1,128], index: 4, kind: input, shape index: {}]   ;;  %s4110_s5 = inlined_call_operand.hbm [shape: f32[8,128], index: 5, kind: output, shape index: {}]  }
   0x1   :  { %11 = vsyncpa [#allocation6], 0 }
   0x2   :  { %12 = vsyncpa [#allocation9], 0  ;;  %s29_s20 = sshll.u32 %s4106_s1, 4  ;;  %s30_s20 = int_to_ptr.hbm [resolvable:$true] %s29_s20 }
   0x3   :  { %13 = vsyncpa [#allocation4], 0  ;;  %s3976_s21 = smov [#allocation5]   ;;  %s19_s25 = sshll.u32 %s4105_s0, 4  ;;  %s20_s25 = int_to_ptr.hbm [resolvable:$true] %s19_s25 }
   0x4   :  { %s31_s22 = sshll.u32 %s3976_s21, 4  ;;  %s3977_s26 = smov 256   ;;  %s32_s22 = int_to_ptr.vmem [resolvable:$true] %s31_s22 }
   0x5   :  { %s3978_s27 = smov 16   ;;  %s3979_s28 = smov [#allocation2]  }
   0x6   :  { %37 = dma.hbm_to_vmem [thread:$0]  %s30_s20, 32768, %s32_s22, [#allocation6], %s3977_s26, %s3977_s26, %s3978_s27  }
   0x7   :  { %s21_s29 = sshll.u32 %s3979_s28, 4  ;;  %s43_s7 = sshll.u32 %s4107_s2, 4  ;;  %s22_s29 = int_to_ptr.vmem [resolvable:$true] %s21_s29  ;;  %s44_s7 = int_to_ptr.hbm [resolvable:$true] %s43_s7 }
   0x8   :  { %24 = dma.hbm_to_vmem [thread:$0]  %s20_s25, 1024, %s22_s29, [#allocation3]  }
   0x9   :  { %s53_s9 = sshll.u32 %s4108_s3, 4  ;;  %s3980_s10 = smov [#allocation7]   ;;  %s54_s9 = int_to_ptr.hbm [resolvable:$true] %s53_s9 }
   0xa   :  { %s45_s11 = sshll.u32 %s3980_s10, 4  ;;  %s3981_s0 = smov [#allocation8]   ;;  %s46_s11 = int_to_ptr.vmem [resolvable:$true] %s45_s11 }
   0xb   :  { %48 = dma.hbm_to_vmem [thread:$0]  %s44_s7, 64, %s46_s11, [#allocation6]  }
   0xc   :  { %s55_s12 = sshll.u32 %s3981_s0, 4  ;;  %s3982_s13 = smov 64   ;;  %s56_s12 = int_to_ptr.vmem [resolvable:$true] %s55_s12 }
   0xd   :  { %s3983_s14 = smov 4  }
   0xe   :  { %61 = dma.hbm_to_vmem [thread:$0]  %s54_s9, 4096, %s56_s12, [#allocation9], %s3982_s13, %s3982_s13, %s3983_s14  }
   0xf   :  { %3968 = dma.done.wait [#allocation3], 1024  }
  0x10   :  { %3969 = vsyncadd [#allocation3], 4294966272 }
  0x11   :  { %3970 = dma.done.wait [#allocation6], 32832  }
  0x12   :  { %3971 = vsyncadd [#allocation6], 4294934464 }
  0x13   :  { %3972 = dma.done.wait [#allocation9], 4096  }
  0x14   :  { %3973 = vsyncadd [#allocation9], 4294963200  ;;  %v2512_v0 = vld [vmem:[#allocation5 + $0xe0] sm:$0xf]  ;;  %v3580_v1 = vld [vmem:[#allocation5 + $0xec] sm:$0xf0] }
  0x15   :  { %v2640_v2 = vld [vmem:[#allocation5 + $0x1e0] sm:$0xf]  ;;  %v2513_v3 = vor.u32 %v3580_v1, %v2512_v0  ;;  %v3612_v4 = vld [vmem:[#allocation5 + $0x1ec] sm:$0xf0]  ;;  %s3984_s15 = smov [#allocation10]   ;;  %s2386_s19 = sshll.u32 %s4110_s5, 4  ;;  %s2387_s19 = int_to_ptr.hbm [resolvable:$true] %s2386_s19 }
  0x16   :  { %v2768_v5 = vld [vmem:[#allocation5 + $0x2e0] sm:$0xf]  ;;  %v3644_v6 = vld [vmem:[#allocation5 + $0x2ec] sm:$0xf0]  ;;  %v2641_v7 = vor.u32 %v3612_v4, %v2640_v2  ;;  %s2384_s16 = sshll.u32 %s3984_s15, 4  ;;  %s2385_s16 = int_to_ptr.vmem [resolvable:$true] %s2384_s16 }
  0x17   :  { %v2769_v8 = vor.u32 %v3644_v6, %v2768_v5  ;;  %v2896_v9 = vld [vmem:[#allocation5 + $0x3e0] sm:$0xf]  ;;  %v3676_v10 = vld [vmem:[#allocation5 + $0x3ec] sm:$0xf0]  ;;  %1642 = vmatpush.bf16.msra.mxu0 %v2513_v3 }
  0x18   :  { %v2496_v11 = vld [vmem:[#allocation5 + $0xc0] sm:$0xf]  ;;  %v2897_v12 = vor.u32 %v3676_v10, %v2896_v9  ;;  %v3576_v13 = vld [vmem:[#allocation5 + $0xcc] sm:$0xf0]  ;;  %1655 = vmatpush.bf16.msra.mxu1 %v2641_v7 }
  0x19   :  { %v2624_v14 = vld [vmem:[#allocation5 + $0x1c0] sm:$0xf]  ;;  %v3608_v15 = vld [vmem:[#allocation5 + $0x1cc] sm:$0xf0]  ;;  %1668 = vmatpush.bf16.msra.mxu2 %v2769_v8  ;;  %v2497_v16 = vor.u32 %v3576_v13, %v2496_v11 }
  0x1a   :  { %v2625_v17 = vor.u32 %v3608_v15, %v2624_v14  ;;  %v2752_v18 = vld [vmem:[#allocation5 + $0x2c0] sm:$0xf]  ;;  %v3640_v19 = vld [vmem:[#allocation5 + $0x2cc] sm:$0xf0]  ;;  %1681 = vmatpush.bf16.msra.mxu3 %v2897_v12 }
  0x1b   :  { %v2880_v20 = vld [vmem:[#allocation5 + $0x3c0] sm:$0xf]  ;;  %v2753_v21 = vor.u32 %v3640_v19, %v2752_v18  ;;  %v3672_v22 = vld [vmem:[#allocation5 + $0x3cc] sm:$0xf0]  ;;  %1643 = vmatpush.bf16.msra.mxu0 %v2497_v16 }
  0x1c   :  { %v2480_v23 = vld [vmem:[#allocation5 + $0xa0] sm:$0xf]  ;;  %v3572_v24 = vld [vmem:[#allocation5 + $0xac] sm:$0xf0]  ;;  %v2881_v25 = vor.u32 %v3672_v22, %v2880_v20  ;;  %1656 = vmatpush.bf16.msra.mxu1 %v2625_v17 }
  0x1d   :  { %v2608_v26 = vld [vmem:[#allocation5 + $0x1a0] sm:$0xf]  ;;  %v3604_v27 = vld [vmem:[#allocation5 + $0x1ac] sm:$0xf0]  ;;  %v2481_v29 = vor.u32 %v3572_v24, %v2480_v23  ;;  %1669 = vmatpush.bf16.msra.mxu2 %v2753_v21 }
  0x1e   :  { %v2736_v28 = vld [vmem:[#allocation5 + $0x2a0] sm:$0xf]  ;;  %v3636_v30 = vld [vmem:[#allocation5 + $0x2ac] sm:$0xf0]  ;;  %v2609_v33 = vor.u32 %v3604_v27, %v2608_v26  ;;  %1682 = vmatpush.bf16.msra.mxu3 %v2881_v25 }
  0x1f   :  { %v2864_v31 = vld [vmem:[#allocation5 + $0x3a0] sm:$0xf]  ;;  %v3668_v32 = vld [vmem:[#allocation5 + $0x3ac] sm:$0xf0]  ;;  %v2737_v34 = vor.u32 %v3636_v30, %v2736_v28  ;;  %1644 = vmatpush.bf16.msra.mxu0 %v2481_v29 }
  0x20   :  { %v2464_v35 = vld [vmem:[#allocation5 + $0x80] sm:$0xf]  ;;  %v3568_v36 = vld [vmem:[#allocation5 + $0x8c] sm:$0xf0]  ;;  %v2865_v38 = vor.u32 %v3668_v32, %v2864_v31  ;;  %1657 = vmatpush.bf16.msra.mxu1 %v2609_v33 }
  0x21   :  { %v2592_v37 = vld [vmem:[#allocation5 + $0x180] sm:$0xf]  ;;  %v3600_v39 = vld [vmem:[#allocation5 + $0x18c] sm:$0xf0]  ;;  %v2465_v44 = vor.u32 %v3568_v36, %v2464_v35  ;;  %1670 = vmatpush.bf16.msra.mxu2 %v2737_v34 }
  0x22   :  { %v2720_v40 = vld [vmem:[#allocation5 + $0x280] sm:$0xf]  ;;  %v3632_v41 = vld [vmem:[#allocation5 + $0x28c] sm:$0xf0]  ;;  %v2593_v45 = vor.u32 %v3600_v39, %v2592_v37  ;;  %1683 = vmatpush.bf16.msra.mxu3 %v2865_v38 }
  0x23   :  { %v2848_v42 = vld [vmem:[#allocation5 + $0x380] sm:$0xf]  ;;  %v3664_v43 = vld [vmem:[#allocation5 + $0x38c] sm:$0xf0]  ;;  %v2721_v46 = vor.u32 %v3632_v41, %v2720_v40  ;;  %1645 = vmatpush.bf16.msra.mxu0 %v2465_v44 }
  0x24   :  { %v2448_v47 = vld [vmem:[#allocation5 + $0x60] sm:$0xf]  ;;  %v3564_v48 = vld [vmem:[#allocation5 + $0x6c] sm:$0xf0]  ;;  %v2849_v50 = vor.u32 %v3664_v43, %v2848_v42  ;;  %1658 = vmatpush.bf16.msra.mxu1 %v2593_v45 }
  0x25   :  { %v2576_v49 = vld [vmem:[#allocation5 + $0x160] sm:$0xf]  ;;  %v3596_v51 = vld [vmem:[#allocation5 + $0x16c] sm:$0xf0]  ;;  %v2449_v56 = vor.u32 %v3564_v48, %v2448_v47  ;;  %1671 = vmatpush.bf16.msra.mxu2 %v2721_v46 }
  0x26   :  { %v2704_v52 = vld [vmem:[#allocation5 + $0x260] sm:$0xf]  ;;  %v3628_v53 = vld [vmem:[#allocation5 + $0x26c] sm:$0xf0]  ;;  %v2577_v57 = vor.u32 %v3596_v51, %v2576_v49  ;;  %1684 = vmatpush.bf16.msra.mxu3 %v2849_v50 }
  0x27   :  { %v2832_v54 = vld [vmem:[#allocation5 + $0x360] sm:$0xf]  ;;  %v3660_v55 = vld [vmem:[#allocation5 + $0x36c] sm:$0xf0]  ;;  %v2705_v58 = vor.u32 %v3628_v53, %v2704_v52  ;;  %1646 = vmatpush.bf16.msra.mxu0 %v2449_v56 }
  0x28   :  { %v2432_v59 = vld [vmem:[#allocation5 + $0x40] sm:$0xf]  ;;  %v3560_v60 = vld [vmem:[#allocation5 + $0x4c] sm:$0xf0]  ;;  %v2833_v62 = vor.u32 %v3660_v55, %v2832_v54  ;;  %1659 = vmatpush.bf16.msra.mxu1 %v2577_v57 }
  0x29   :  { %v2560_v61 = vld [vmem:[#allocation5 + $0x140] sm:$0xf]  ;;  %v3592_v63 = vld [vmem:[#allocation5 + $0x14c] sm:$0xf0]  ;;  %v2433_v4 = vor.u32 %v3560_v60, %v2432_v59  ;;  %1672 = vmatpush.bf16.msra.mxu2 %v2705_v58 }
  0x2a   :  { %v2688_v0 = vld [vmem:[#allocation5 + $0x240] sm:$0xf]  ;;  %v3624_v1 = vld [vmem:[#allocation5 + $0x24c] sm:$0xf0]  ;;  %v2561_v5 = vor.u32 %v3592_v63, %v2560_v61  ;;  %1685 = vmatpush.bf16.msra.mxu3 %v2833_v62 }
  0x2b   :  { %v2816_v2 = vld [vmem:[#allocation5 + $0x340] sm:$0xf]  ;;  %v3656_v3 = vld [vmem:[#allocation5 + $0x34c] sm:$0xf0]  ;;  %v2689_v6 = vor.u32 %v3624_v1, %v2688_v0  ;;  %1647 = vmatpush.bf16.msra.mxu0 %v2433_v4 }
  0x2c   :  { %v2416_v7 = vld [vmem:[#allocation5 + $0x20] sm:$0xf]  ;;  %v3556_v8 = vld [vmem:[#allocation5 + $0x2c] sm:$0xf0]  ;;  %v2817_v10 = vor.u32 %v3656_v3, %v2816_v2  ;;  %1660 = vmatpush.bf16.msra.mxu1 %v2561_v5 }
  0x2d   :  { %v2544_v9 = vld [vmem:[#allocation5 + $0x120] sm:$0xf]  ;;  %v3588_v11 = vld [vmem:[#allocation5 + $0x12c] sm:$0xf0]  ;;  %v2417_v16 = vor.u32 %v3556_v8, %v2416_v7  ;;  %1673 = vmatpush.bf16.msra.mxu2 %v2689_v6 }
  0x2e   :  { %v2672_v12 = vld [vmem:[#allocation5 + $0x220] sm:$0xf]  ;;  %v3620_v13 = vld [vmem:[#allocation5 + $0x22c] sm:$0xf0]  ;;  %v2545_v19 = vor.u32 %v3588_v11, %v2544_v9  ;;  %1686 = vmatpush.bf16.msra.mxu3 %v2817_v10  ;;  %v83_v10 = vld [vmem:[#allocation2 + $0x18] sm:$0xff] }
  0x2f   :  { %v2800_v14 = vld [vmem:[#allocation5 + $0x320] sm:$0xf]  ;;  %v3652_v15 = vld [vmem:[#allocation5 + $0x32c] sm:$0xf0]  ;;  %v2673_v20 = vor.u32 %v3620_v13, %v2672_v12  ;;  %1648 = vmatpush.bf16.msra.mxu0 %v2417_v16 }
  0x30   :  { %v2400_v17 = vld [vmem:[#allocation5] sm:$0xf]  ;;  %v3552_v18 = vld [vmem:[#allocation5 + $0xc] sm:$0xf0]  ;;  %v2801_v24 = vor.u32 %v3652_v15, %v2800_v14  ;;  %1661 = vmatpush.bf16.msra.mxu1 %v2545_v19  ;;  %v4031_v15 = vpack.c.bf16 %v83_v10, %v83_v10  ;;  %v81_v19 = vld [vmem:[#allocation2 + $0x8] sm:$0xff] }
  0x31   :  { %v2528_v21 = vld [vmem:[#allocation5 + $0x100] sm:$0xf]  ;;  %v3584_v22 = vld [vmem:[#allocation5 + $0x10c] sm:$0xf0]  ;;  %v2401_v31 = vor.u32 %v3552_v18, %v2400_v17  ;;  %1674 = vmatpush.bf16.msra.mxu2 %v2673_v20  ;;  %v2642_v10 = vld [vmem:[#allocation5 + $0x1f0] sm:$0xf0] }
  0x32   :  { %v2656_v23 = vld [vmem:[#allocation5 + $0x200] sm:$0xf]  ;;  %v3616_v25 = vld [vmem:[#allocation5 + $0x20c] sm:$0xf0]  ;;  %v2529_v35 = vor.u32 %v3584_v22, %v2528_v21  ;;  %1687 = vmatpush.bf16.msra.mxu3 %v2801_v24 }
  0x33   :  { %v2784_v26 = vld [vmem:[#allocation5 + $0x300] sm:$0xf]  ;;  %v3648_v27 = vld [vmem:[#allocation5 + $0x30c] sm:$0xf0]  ;;  %v2657_v36 = vor.u32 %v3616_v25, %v2656_v23  ;;  %1649 = vmatpush.bf16.msra.mxu0 %v2401_v31  ;;  %v4036_v25 = vpack.c.bf16 %v81_v19, %v81_v19 }
  0x34   :  { %v3024_v28 = vld [vmem:[#allocation5 + $0x4e0] sm:$0xf]  ;;  %v3708_v29 = vld [vmem:[#allocation5 + $0x4ec] sm:$0xf0]  ;;  %v2785_v39 = vor.u32 %v3648_v27, %v2784_v26  ;;  %1662 = vmatpush.bf16.msra.mxu1 %v2529_v35 }
  0x35   :  { %v3152_v30 = vld [vmem:[#allocation5 + $0x5e0] sm:$0xf]  ;;  %v3740_v32 = vld [vmem:[#allocation5 + $0x5ec] sm:$0xf0]  ;;  %v3025_v40 = vor.u32 %v3708_v29, %v3024_v28  ;;  %1675 = vmatpush.bf16.msra.mxu2 %v2657_v36 }
  0x36   :  { %v3280_v33 = vld [vmem:[#allocation5 + $0x6e0] sm:$0xf]  ;;  %v3772_v34 = vld [vmem:[#allocation5 + $0x6ec] sm:$0xf0]  ;;  %v3153_v41 = vor.u32 %v3740_v32, %v3152_v30  ;;  %1688 = vmatpush.bf16.msra.mxu3 %v2785_v39 }
  0x37   :  { %v3408_v37 = vld [vmem:[#allocation5 + $0x7e0] sm:$0xf]  ;;  %v3804_v38 = vld [vmem:[#allocation5 + $0x7ec] sm:$0xf0]  ;;  %v3281_v42 = vor.u32 %v3772_v34, %v3280_v33  ;;  %1694 = vmatpush.bf16.msrb.mxu0 %v3025_v40  ;;  %1663 = vmatmul.bf16.vlgmr.msra.gmra.mxu1 %v4036_v25 }
  0x38   :  { %v3008_v43 = vld [vmem:[#allocation5 + $0x4c0] sm:$0xf]  ;;  %v3704_v44 = vld [vmem:[#allocation5 + $0x4cc] sm:$0xf0]  ;;  %v3409_v46 = vor.u32 %v3804_v38, %v3408_v37  ;;  %1707 = vmatpush.bf16.msrb.mxu1 %v3153_v41 }
  0x39   :  { %v3136_v45 = vld [vmem:[#allocation5 + $0x5c0] sm:$0xf]  ;;  %v3736_v47 = vld [vmem:[#allocation5 + $0x5cc] sm:$0xf0]  ;;  %v3009_v52 = vor.u32 %v3704_v44, %v3008_v43  ;;  %1720 = vmatpush.bf16.msrb.mxu2 %v3281_v42  ;;  %1689 = vmatmul.bf16.vlgmr.msra.gmra.mxu3 %v4031_v15 }
  0x3a   :  { %v3264_v48 = vld [vmem:[#allocation5 + $0x6c0] sm:$0xf]  ;;  %v3768_v49 = vld [vmem:[#allocation5 + $0x6cc] sm:$0xf0]  ;;  %v3137_v54 = vor.u32 %v3736_v47, %v3136_v45  ;;  %1733 = vmatpush.bf16.msrb.mxu3 %v3409_v46 }
  0x3b   :  { %v3392_v50 = vld [vmem:[#allocation5 + $0x7c0] sm:$0xf]  ;;  %v3800_v51 = vld [vmem:[#allocation5 + $0x7cc] sm:$0xf0]  ;;  %v3265_v55 = vor.u32 %v3768_v49, %v3264_v48  ;;  %1695 = vmatpush.bf16.msrb.mxu0 %v3009_v52 }
  0x3c   :  { %v2992_v53 = vld [vmem:[#allocation5 + $0x4a0] sm:$0xf]  ;;  %v3700_v56 = vld [vmem:[#allocation5 + $0x4ac] sm:$0xf0]  ;;  %v3393_v59 = vor.u32 %v3800_v51, %v3392_v50  ;;  %1708 = vmatpush.bf16.msrb.mxu1 %v3137_v54 }
  0x3d   :  { %v3120_v57 = vld [vmem:[#allocation5 + $0x5a0] sm:$0xf]  ;;  %v3732_v58 = vld [vmem:[#allocation5 + $0x5ac] sm:$0xf0]  ;;  %v2993_v0 = vor.u32 %v3700_v56, %v2992_v53  ;;  %1721 = vmatpush.bf16.msrb.mxu2 %v3265_v55 }
  0x3e   :  { %v3248_v60 = vld [vmem:[#allocation5 + $0x6a0] sm:$0xf]  ;;  %v3764_v61 = vld [vmem:[#allocation5 + $0x6ac] sm:$0xf0]  ;;  %v3121_v1 = vor.u32 %v3732_v58, %v3120_v57  ;;  %1734 = vmatpush.bf16.msrb.mxu3 %v3393_v59 }
  0x3f   :  { %v3376_v62 = vld [vmem:[#allocation5 + $0x7a0] sm:$0xf]  ;;  %v3796_v63 = vld [vmem:[#allocation5 + $0x7ac] sm:$0xf0]  ;;  %v3249_v5 = vor.u32 %v3764_v61, %v3248_v60  ;;  %1696 = vmatpush.bf16.msrb.mxu0 %v2993_v0 }
  0x40   :  { %v2976_v2 = vld [vmem:[#allocation5 + $0x480] sm:$0xf]  ;;  %v82_v3 = vld [vmem:[#allocation2 + $0x10] sm:$0xff]  ;;  %v3377_v11 = vor.u32 %v3796_v63, %v3376_v62  ;;  %1709 = vmatpush.bf16.msrb.mxu1 %v3121_v1 }
  0x41   :  { %v80_v4 = vld [vmem:[#allocation2] sm:$0xff]  ;;  %v3696_v6 = vld [vmem:[#allocation5 + $0x48c] sm:$0xf0]  ;;  %v4027_v8 = vpack.c.bf16 %v82_v3, %v82_v3  ;;  %1722 = vmatpush.bf16.msrb.mxu2 %v3249_v5  ;;  %v2514_v5 = vld [vmem:[#allocation5 + $0xf0] sm:$0xf0] }
  0x42   :  { %v3104_v7 = vld [vmem:[#allocation5 + $0x580] sm:$0xf]  ;;  %v4029_v9 = vpack.c.bf16 %v80_v4, %v80_v4  ;;  %v3728_v12 = vld [vmem:[#allocation5 + $0x58c] sm:$0xf0]  ;;  %v2977_v18 = vor.u32 %v3696_v6, %v2976_v2  ;;  %1735 = vmatpush.bf16.msrb.mxu3 %v3377_v11  ;;  %v3578_v4 = vld [vmem:[#allocation5 + $0xe4] sm:$0xf] }
  0x43   :  { %v3232_v13 = vld [vmem:[#allocation5 + $0x680] sm:$0xf]  ;;  %v3760_v14 = vld [vmem:[#allocation5 + $0x68c] sm:$0xf0]  ;;  %1676 = vmatmul.bf16.vlgmr.msra.gmra.mxu2 %v4027_v8  ;;  %v3105_v20 = vor.u32 %v3728_v12, %v3104_v7  ;;  %v3610_v6 = vld [vmem:[#allocation5 + $0x1e4] sm:$0xf] }
  0x44   :  { %v3360_v16 = vld [vmem:[#allocation5 + $0x780] sm:$0xf]  ;;  %v3792_v17 = vld [vmem:[#allocation5 + $0x78c] sm:$0xf0]  ;;  %1650 = vmatmul.bf16.vlgmr.msra.gmra.mxu0 %v4029_v9  ;;  %v3233_v21 = vor.u32 %v3760_v14, %v3232_v13  ;;  %v3642_v11 = vld [vmem:[#allocation5 + $0x2e4] sm:$0xf] }
  0x45   :  { %v2960_v22 = vld [vmem:[#allocation5 + $0x460] sm:$0xf]  ;;  %v3692_v23 = vld [vmem:[#allocation5 + $0x46c] sm:$0xf0]  ;;  %v3361_v26 = vor.u32 %v3792_v17, %v3360_v16  ;;  %1697 = vmatpush.bf16.msrb.mxu0 %v2977_v18  ;;  %1710 = vmatpush.bf16.msrb.mxu1 %v3105_v20  ;;  %v2770_v12 = vld [vmem:[#allocation5 + $0x2f0] sm:$0xf0]  ;;  %v2517_v20 = vor.u32 %v3578_v4, %v2514_v5 }
  0x46   :  { %v3088_v24 = vld [vmem:[#allocation5 + $0x560] sm:$0xf]  ;;  %v3724_v27 = vld [vmem:[#allocation5 + $0x56c] sm:$0xf0]  ;;  %v2961_v32 = vor.u32 %v3692_v23, %v2960_v22  ;;  %1723 = vmatpush.bf16.msrb.mxu2 %v3233_v21  ;;  %v3674_v16 = vld [vmem:[#allocation5 + $0x3e4] sm:$0xf] }
  0x47   :  { %v3216_v28 = vld [vmem:[#allocation5 + $0x660] sm:$0xf]  ;;  %v3756_v29 = vld [vmem:[#allocation5 + $0x66c] sm:$0xf0]  ;;  %v3089_v33 = vor.u32 %v3724_v27, %v3088_v24  ;;  %1736 = vmatpush.bf16.msrb.mxu3 %v3361_v26  ;;  %v2898_v17 = vld [vmem:[#allocation5 + $0x3f0] sm:$0xf0]  ;;  %v2645_v24 = vor.u32 %v3610_v6, %v2642_v10  ;;  %v2773_v26 = vor.u32 %v3642_v11, %v2770_v12 }
  0x48   :  { %v3344_v30 = vld [vmem:[#allocation5 + $0x760] sm:$0xf]  ;;  %v3788_v31 = vld [vmem:[#allocation5 + $0x76c] sm:$0xf0]  ;;  %v3217_v34 = vor.u32 %v3756_v29, %v3216_v28  ;;  %v3574_v21 = vld [vmem:[#allocation5 + $0xc4] sm:$0xf] }
  0x49   :  { %v2944_v35 = vld [vmem:[#allocation5 + $0x440] sm:$0xf]  ;;  %v3688_v36 = vld [vmem:[#allocation5 + $0x44c] sm:$0xf0]  ;;  %v3345_v38 = vor.u32 %v3788_v31, %v3344_v30  ;;  %1698 = vmatpush.bf16.msrb.mxu0 %v2961_v32  ;;  %1711 = vmatpush.bf16.msrb.mxu1 %v3089_v33  ;;  %v87_v23 = vld [vmem:[#allocation2 + $0x38] sm:$0xff]  ;;  %v2901_v30 = vor.u32 %v3674_v16, %v2898_v17 }
  0x4a   :  { %v3072_v37 = vld [vmem:[#allocation5 + $0x540] sm:$0xf]  ;;  %v3720_v39 = vld [vmem:[#allocation5 + $0x54c] sm:$0xf0]  ;;  %v2945_v44 = vor.u32 %v3688_v36, %v2944_v35  ;;  %1724 = vmatpush.bf16.msrb.mxu2 %v3217_v34  ;;  %v2498_v27 = vld [vmem:[#allocation5 + $0xd0] sm:$0xf0] }
  0x4b   :  { %v3200_v40 = vld [vmem:[#allocation5 + $0x640] sm:$0xf]  ;;  %v3752_v41 = vld [vmem:[#allocation5 + $0x64c] sm:$0xf0]  ;;  %v3073_v45 = vor.u32 %v3720_v39, %v3072_v37  ;;  %1737 = vmatpush.bf16.msrb.mxu3 %v3345_v38  ;;  %v3606_v28 = vld [vmem:[#allocation5 + $0x1c4] sm:$0xf]  ;;  %v4043_v38 = vpack.c.bf16 %v87_v23, %v87_v23  ;;  %v2501_v39 = vor.u32 %v3574_v21, %v2498_v27 }
  0x4c   :  { %v3328_v42 = vld [vmem:[#allocation5 + $0x740] sm:$0xf]  ;;  %v3784_v43 = vld [vmem:[#allocation5 + $0x74c] sm:$0xf0]  ;;  %v3201_v46 = vor.u32 %v3752_v41, %v3200_v40  ;;  %v85_v29 = vld [vmem:[#allocation2 + $0x28] sm:$0xff] }
  0x4d   :  { %v2928_v47 = vld [vmem:[#allocation5 + $0x420] sm:$0xf]  ;;  %v3684_v48 = vld [vmem:[#allocation5 + $0x42c] sm:$0xf0]  ;;  %v3329_v50 = vor.u32 %v3784_v43, %v3328_v42  ;;  %1699 = vmatpush.bf16.msrb.mxu0 %v2945_v44  ;;  %1712 = vmatpush.bf16.msrb.mxu1 %v3073_v45  ;;  %v2626_v31 = vld [vmem:[#allocation5 + $0x1d0] sm:$0xf0]  ;;  %v4045_v40 = vpack.c.bf16 %v85_v29, %v85_v29 }
  0x4e   :  { %v3056_v49 = vld [vmem:[#allocation5 + $0x520] sm:$0xf]  ;;  %v3716_v51 = vld [vmem:[#allocation5 + $0x52c] sm:$0xf0]  ;;  %v2929_v56 = vor.u32 %v3684_v48, %v2928_v47  ;;  %1725 = vmatpush.bf16.msrb.mxu2 %v3201_v46  ;;  %v3638_v32 = vld [vmem:[#allocation5 + $0x2c4] sm:$0xf]  ;;  %v2629_v41 = vor.u32 %v3606_v28, %v2626_v31 }
  0x4f   :  { %v3184_v52 = vld [vmem:[#allocation5 + $0x620] sm:$0xf]  ;;  %v3748_v53 = vld [vmem:[#allocation5 + $0x62c] sm:$0xf0]  ;;  %v3057_v59 = vor.u32 %v3716_v51, %v3056_v49  ;;  %1738 = vmatpush.bf16.msrb.mxu3 %v3329_v50  ;;  %v2754_v33 = vld [vmem:[#allocation5 + $0x2d0] sm:$0xf0] }
  0x50   :  { %v3312_v54 = vld [vmem:[#allocation5 + $0x720] sm:$0xf]  ;;  %v3780_v55 = vld [vmem:[#allocation5 + $0x72c] sm:$0xf0]  ;;  %v3185_v60 = vor.u32 %v3748_v53, %v3184_v52  ;;  %v3670_v35 = vld [vmem:[#allocation5 + $0x3c4] sm:$0xf]  ;;  %v2757_v42 = vor.u32 %v3638_v32, %v2754_v33 }
  0x51   :  { %v2912_v57 = vld [vmem:[#allocation5 + $0x400] sm:$0xf]  ;;  %v3680_v58 = vld [vmem:[#allocation5 + $0x40c] sm:$0xf0]  ;;  %v3313_v0 = vor.u32 %v3780_v55, %v3312_v54  ;;  %1700 = vmatpush.bf16.msrb.mxu0 %v2929_v56  ;;  %1713 = vmatpush.bf16.msrb.mxu1 %v3057_v59  ;;  %v2882_v36 = vld [vmem:[#allocation5 + $0x3d0] sm:$0xf0] }
  0x52   :  { %v3040_v61 = vld [vmem:[#allocation5 + $0x500] sm:$0xf]  ;;  %v3712_v62 = vld [vmem:[#allocation5 + $0x50c] sm:$0xf0]  ;;  %v2913_v7 = vor.u32 %v3680_v58, %v2912_v57  ;;  %1726 = vmatpush.bf16.msrb.mxu2 %v3185_v60  ;;  %v3570_v43 = vld [vmem:[#allocation5 + $0xa4] sm:$0xf]  ;;  %v2885_v46 = vor.u32 %v3670_v35, %v2882_v36 }
  0x53   :  { %v3168_v63 = vld [vmem:[#allocation5 + $0x600] sm:$0xf]  ;;  %v3744_v1 = vld [vmem:[#allocation5 + $0x60c] sm:$0xf0]  ;;  %v3041_v13 = vor.u32 %v3712_v62, %v3040_v61  ;;  %1739 = vmatpush.bf16.msrb.mxu3 %v3313_v0  ;;  %v2482_v44 = vld [vmem:[#allocation5 + $0xb0] sm:$0xf0] }
  0x54   :  { %v3296_v2 = vld [vmem:[#allocation5 + $0x700] sm:$0xf]  ;;  %v3776_v3 = vld [vmem:[#allocation5 + $0x70c] sm:$0xf0]  ;;  %v3169_v14 = vor.u32 %v3744_v1, %v3168_v63  ;;  %v3602_v45 = vld [vmem:[#allocation5 + $0x1a4] sm:$0xf]  ;;  %v2485_v52 = vor.u32 %v3570_v43, %v2482_v44 }
  0x55   :  { %v86_v18 = vld [vmem:[#allocation2 + $0x30] sm:$0xff]  ;;  %v3297_v19 = vor.u32 %v3776_v3, %v3296_v2  ;;  %v84_v22 = vld [vmem:[#allocation2 + $0x20] sm:$0xff]  ;;  %1701 = vmatpush.bf16.msrb.mxu0 %v2913_v7  ;;  %1714 = vmatpush.bf16.msrb.mxu1 %v3041_v13 }
  0x56   :  { %v4039_v34 = vpack.c.bf16 %v86_v18, %v86_v18  ;;  %1727 = vmatpush.bf16.msrb.mxu2 %v3169_v14  ;;  %v4041_v37 = vpack.c.bf16 %v84_v22, %v84_v22  ;;  %v2610_v47 = vld [vmem:[#allocation5 + $0x1b0] sm:$0xf0]  ;;  %v3634_v48 = vld [vmem:[#allocation5 + $0x2a4] sm:$0xf] }
  0x57   :  { %1740 = vmatpush.bf16.msrb.mxu3 %v3297_v19  ;;  %v2738_v49 = vld [vmem:[#allocation5 + $0x2b0] sm:$0xf0]  ;;  %v3666_v50 = vld [vmem:[#allocation5 + $0x3a4] sm:$0xf]  ;;  %v2613_v53 = vor.u32 %v3602_v45, %v2610_v47 }
  0x58   :  { %v2866_v51 = vld [vmem:[#allocation5 + $0x3b0] sm:$0xf0]  ;;  %1702 = vmatmul.bf16.vlgmr.msrb.gmra.mxu0 %v4041_v37  ;;  %1715 = vmatmul.bf16.vlgmr.msrb.gmra.mxu1 %v4045_v40  ;;  %v2741_v54 = vor.u32 %v3634_v48, %v2738_v49  ;;  %v3566_v55 = vld [vmem:[#allocation5 + $0x84] sm:$0xf] }
  0x59   :  { %1746 = vmatpush.bf16.msra.mxu0 %v2517_v20  ;;  %1759 = vmatpush.bf16.msra.mxu1 %v2645_v24  ;;  %v2466_v56 = vld [vmem:[#allocation5 + $0x90] sm:$0xf0]  ;;  %v3598_v57 = vld [vmem:[#allocation5 + $0x184] sm:$0xf]  ;;  %v2869_v58 = vor.u32 %v3666_v50, %v2866_v51 }
  0x5a   :  { %1772 = vmatpush.bf16.msra.mxu2 %v2773_v26  ;;  %1741 = vmatmul.bf16.vlgmr.msrb.gmra.mxu3 %v4043_v38  ;;  %v2594_v59 = vld [vmem:[#allocation5 + $0x190] sm:$0xf0]  ;;  %v3630_v60 = vld [vmem:[#allocation5 + $0x284] sm:$0xf]  ;;  %v2469_v0 = vor.u32 %v3566_v55, %v2466_v56 }
  0x5b   :  { %1785 = vmatpush.bf16.msra.mxu3 %v2901_v30  ;;  %1728 = vmatmul.bf16.vlgmr.msrb.gmra.mxu2 %v4039_v34  ;;  %v2722_v61 = vld [vmem:[#allocation5 + $0x290] sm:$0xf0]  ;;  %v3662_v62 = vld [vmem:[#allocation5 + $0x384] sm:$0xf]  ;;  %v2597_v1 = vor.u32 %v3598_v57, %v2594_v59 }
  0x5c   :  { %v2850_v63 = vld [vmem:[#allocation5 + $0x390] sm:$0xf0]  ;;  %v2725_v2 = vor.u32 %v3630_v60, %v2722_v61  ;;  %v3562_v3 = vld [vmem:[#allocation5 + $0x64] sm:$0xf] }
  0x5d   :  { %1747 = vmatpush.bf16.msra.mxu0 %v2501_v39  ;;  %1760 = vmatpush.bf16.msra.mxu1 %v2629_v41  ;;  %v2450_v4 = vld [vmem:[#allocation5 + $0x70] sm:$0xf0]  ;;  %v3594_v5 = vld [vmem:[#allocation5 + $0x164] sm:$0xf]  ;;  %v2853_v6 = vor.u32 %v3662_v62, %v2850_v63 }
  0x5e   :  { %1773 = vmatpush.bf16.msra.mxu2 %v2757_v42  ;;  %v2578_v7 = vld [vmem:[#allocation5 + $0x170] sm:$0xf0]  ;;  %v3626_v10 = vld [vmem:[#allocation5 + $0x264] sm:$0xf]  ;;  %v2453_v14 = vor.u32 %v3562_v3, %v2450_v4 }
  0x5f   :  { %1786 = vmatpush.bf16.msra.mxu3 %v2885_v46  ;;  %v2706_v11 = vld [vmem:[#allocation5 + $0x270] sm:$0xf0]  ;;  %v3658_v12 = vld [vmem:[#allocation5 + $0x364] sm:$0xf]  ;;  %v2581_v16 = vor.u32 %v3594_v5, %v2578_v7 }
  0x60   :  { %v2834_v13 = vld [vmem:[#allocation5 + $0x370] sm:$0xf0]  ;;  %v2709_v17 = vor.u32 %v3626_v10, %v2706_v11  ;;  %v3558_v18 = vld [vmem:[#allocation5 + $0x44] sm:$0xf] }
  0x61   :  { %1748 = vmatpush.bf16.msra.mxu0 %v2485_v52  ;;  %1761 = vmatpush.bf16.msra.mxu1 %v2613_v53  ;;  %v2434_v19 = vld [vmem:[#allocation5 + $0x50] sm:$0xf0]  ;;  %v3590_v20 = vld [vmem:[#allocation5 + $0x144] sm:$0xf]  ;;  %v2837_v21 = vor.u32 %v3658_v12, %v2834_v13 }
  0x62   :  { %1774 = vmatpush.bf16.msra.mxu2 %v2741_v54  ;;  %v2562_v22 = vld [vmem:[#allocation5 + $0x150] sm:$0xf0]  ;;  %v3622_v23 = vld [vmem:[#allocation5 + $0x244] sm:$0xf]  ;;  %v2437_v28 = vor.u32 %v3558_v18, %v2434_v19 }
  0x63   :  { %1787 = vmatpush.bf16.msra.mxu3 %v2869_v58  ;;  %v2690_v24 = vld [vmem:[#allocation5 + $0x250] sm:$0xf0]  ;;  %v3654_v26 = vld [vmem:[#allocation5 + $0x344] sm:$0xf]  ;;  %v2565_v29 = vor.u32 %v3590_v20, %v2562_v22 }
  0x64   :  { %v2818_v27 = vld [vmem:[#allocation5 + $0x350] sm:$0xf0]  ;;  %v2693_v30 = vor.u32 %v3622_v23, %v2690_v24  ;;  %v3554_v31 = vld [vmem:[#allocation5 + $0x24] sm:$0xf] }
  0x65   :  { %1749 = vmatpush.bf16.msra.mxu0 %v2469_v0  ;;  %1762 = vmatpush.bf16.msra.mxu1 %v2597_v1  ;;  %v2418_v32 = vld [vmem:[#allocation5 + $0x30] sm:$0xf0]  ;;  %v3586_v33 = vld [vmem:[#allocation5 + $0x124] sm:$0xf]  ;;  %v2821_v35 = vor.u32 %v3654_v26, %v2818_v27 }
  0x66   :  { %1775 = vmatpush.bf16.msra.mxu2 %v2725_v2  ;;  %v2546_v36 = vld [vmem:[#allocation5 + $0x130] sm:$0xf0]  ;;  %v3618_v39 = vld [vmem:[#allocation5 + $0x224] sm:$0xf]  ;;  %v2421_v44 = vor.u32 %v3554_v31, %v2418_v32 }
  0x67   :  { %1788 = vmatpush.bf16.msra.mxu3 %v2853_v6  ;;  %v2674_v41 = vld [vmem:[#allocation5 + $0x230] sm:$0xf0]  ;;  %v3650_v42 = vld [vmem:[#allocation5 + $0x324] sm:$0xf]  ;;  %v2549_v47 = vor.u32 %v3586_v33, %v2546_v36 }
  0x68   :  { %v2802_v43 = vld [vmem:[#allocation5 + $0x330] sm:$0xf0]  ;;  %v3550_v45 = vld [vmem:[#allocation5 + $0x4] sm:$0xf]  ;;  %v2677_v48 = vor.u32 %v3618_v39, %v2674_v41 }
  0x69   :  { %1750 = vmatpush.bf16.msra.mxu0 %v2453_v14  ;;  %1763 = vmatpush.bf16.msra.mxu1 %v2581_v16  ;;  %v2402_v46 = vld [vmem:[#allocation5 + $0x10] sm:$0xf0]  ;;  %v3582_v49 = vld [vmem:[#allocation5 + $0x104] sm:$0xf]  ;;  %v2805_v52 = vor.u32 %v3650_v42, %v2802_v43 }
  0x6a   :  { %1776 = vmatpush.bf16.msra.mxu2 %v2709_v17  ;;  %v2530_v50 = vld [vmem:[#allocation5 + $0x110] sm:$0xf0]  ;;  %v3614_v51 = vld [vmem:[#allocation5 + $0x204] sm:$0xf]  ;;  %v2405_v59 = vor.u32 %v3550_v45, %v2402_v46 }
  0x6b   :  { %1789 = vmatpush.bf16.msra.mxu3 %v2837_v21  ;;  %v2658_v53 = vld [vmem:[#allocation5 + $0x210] sm:$0xf0]  ;;  %v3646_v54 = vld [vmem:[#allocation5 + $0x304] sm:$0xf]  ;;  %v2533_v63 = vor.u32 %v3582_v49, %v2530_v50 }
  0x6c   :  { %v2786_v55 = vld [vmem:[#allocation5 + $0x310] sm:$0xf0]  ;;  %v3706_v56 = vld [vmem:[#allocation5 + $0x4e4] sm:$0xf]  ;;  %v2661_v0 = vor.u32 %v3614_v51, %v2658_v53 }
  0x6d   :  { %1751 = vmatpush.bf16.msra.mxu0 %v2437_v28  ;;  %1764 = vmatpush.bf16.msra.mxu1 %v2565_v29  ;;  %v3026_v57 = vld [vmem:[#allocation5 + $0x4f0] sm:$0xf0]  ;;  %v3738_v58 = vld [vmem:[#allocation5 + $0x5e4] sm:$0xf]  ;;  %v2789_v3 = vor.u32 %v3646_v54, %v2786_v55 }
  0x6e   :  { %1777 = vmatpush.bf16.msra.mxu2 %v2693_v30  ;;  %v3154_v60 = vld [vmem:[#allocation5 + $0x5f0] sm:$0xf0]  ;;  %v3770_v61 = vld [vmem:[#allocation5 + $0x6e4] sm:$0xf]  ;;  %v3029_v4 = vor.u32 %v3706_v56, %v3026_v57 }
  0x6f   :  { %1790 = vmatpush.bf16.msra.mxu3 %v2821_v35  ;;  %v3282_v62 = vld [vmem:[#allocation5 + $0x6f0] sm:$0xf0]  ;;  %v3802_v1 = vld [vmem:[#allocation5 + $0x7e4] sm:$0xf]  ;;  %v3157_v5 = vor.u32 %v3738_v58, %v3154_v60 }
  0x70   :  { %v3410_v2 = vld [vmem:[#allocation5 + $0x7f0] sm:$0xf0]  ;;  %v3285_v6 = vor.u32 %v3770_v61, %v3282_v62  ;;  %v3702_v7 = vld [vmem:[#allocation5 + $0x4c4] sm:$0xf] }
  0x71   :  { %1752 = vmatpush.bf16.msra.mxu0 %v2421_v44  ;;  %1765 = vmatpush.bf16.msra.mxu1 %v2549_v47  ;;  %v3010_v10 = vld [vmem:[#allocation5 + $0x4d0] sm:$0xf0]  ;;  %v3734_v11 = vld [vmem:[#allocation5 + $0x5c4] sm:$0xf]  ;;  %v3413_v12 = vor.u32 %v3802_v1, %v3410_v2 }
  0x72   :  { %1778 = vmatpush.bf16.msra.mxu2 %v2677_v48  ;;  %v3138_v13 = vld [vmem:[#allocation5 + $0x5d0] sm:$0xf0]  ;;  %v3766_v14 = vld [vmem:[#allocation5 + $0x6c4] sm:$0xf]  ;;  %v3013_v19 = vor.u32 %v3702_v7, %v3010_v10 }
  0x73   :  { %1791 = vmatpush.bf16.msra.mxu3 %v2805_v52  ;;  %v3266_v16 = vld [vmem:[#allocation5 + $0x6d0] sm:$0xf0]  ;;  %v3798_v17 = vld [vmem:[#allocation5 + $0x7c4] sm:$0xf]  ;;  %v3141_v20 = vor.u32 %v3734_v11, %v3138_v13 }
  0x74   :  { %v3394_v18 = vld [vmem:[#allocation5 + $0x7d0] sm:$0xf0]  ;;  %v3269_v21 = vor.u32 %v3766_v14, %v3266_v16  ;;  %v3698_v22 = vld [vmem:[#allocation5 + $0x4a4] sm:$0xf] }
  0x75   :  { %1753 = vmatpush.bf16.msra.mxu0 %v2405_v59  ;;  %1766 = vmatpush.bf16.msra.mxu1 %v2533_v63  ;;  %v2994_v23 = vld [vmem:[#allocation5 + $0x4b0] sm:$0xf0]  ;;  %v3730_v24 = vld [vmem:[#allocation5 + $0x5a4] sm:$0xf]  ;;  %v3397_v26 = vor.u32 %v3798_v17, %v3394_v18 }
  0x76   :  { %1779 = vmatpush.bf16.msra.mxu2 %v2661_v0  ;;  %v3122_v27 = vld [vmem:[#allocation5 + $0x5b0] sm:$0xf0]  ;;  %v3762_v28 = vld [vmem:[#allocation5 + $0x6a4] sm:$0xf]  ;;  %v2997_v32 = vor.u32 %v3698_v22, %v2994_v23 }
  0x77   :  { %1792 = vmatpush.bf16.msra.mxu3 %v2789_v3  ;;  %v3250_v29 = vld [vmem:[#allocation5 + $0x6b0] sm:$0xf0]  ;;  %v3794_v30 = vld [vmem:[#allocation5 + $0x7a4] sm:$0xf]  ;;  %v3125_v33 = vor.u32 %v3730_v24, %v3122_v27 }
  0x78   :  { %v3378_v31 = vld [vmem:[#allocation5 + $0x7b0] sm:$0xf0]  ;;  %1754 = vmatmul.bf16.vlgmr.msra.gmra.mxu0 %v4029_v9  ;;  %1767 = vmatmul.bf16.vlgmr.msra.gmra.mxu1 %v4036_v25  ;;  %v3253_v35 = vor.u32 %v3762_v28, %v3250_v29  ;;  %v3694_v36 = vld [vmem:[#allocation5 + $0x484] sm:$0xf] }
  0x79   :  { %1798 = vmatpush.bf16.msrb.mxu0 %v3029_v4  ;;  %1811 = vmatpush.bf16.msrb.mxu1 %v3157_v5  ;;  %v2978_v39 = vld [vmem:[#allocation5 + $0x490] sm:$0xf0]  ;;  %v3726_v41 = vld [vmem:[#allocation5 + $0x584] sm:$0xf]  ;;  %v3381_v42 = vor.u32 %v3794_v30, %v3378_v31 }
  0x7a   :  { %1824 = vmatpush.bf16.msrb.mxu2 %v3285_v6  ;;  %1793 = vmatmul.bf16.vlgmr.msra.gmra.mxu3 %v4031_v15  ;;  %v3106_v43 = vld [vmem:[#allocation5 + $0x590] sm:$0xf0]  ;;  %v3758_v44 = vld [vmem:[#allocation5 + $0x684] sm:$0xf]  ;;  %v2981_v48 = vor.u32 %v3694_v36, %v2978_v39  ;;  %v2520_v39 = vld [vmem:[#allocation5 + $0xe8] sm:$0xf] }
  0x7b   :  { %1837 = vmatpush.bf16.msrb.mxu3 %v3413_v12  ;;  %1780 = vmatmul.bf16.vlgmr.msra.gmra.mxu2 %v4027_v8  ;;  %v3234_v45 = vld [vmem:[#allocation5 + $0x690] sm:$0xf0]  ;;  %v3790_v46 = vld [vmem:[#allocation5 + $0x784] sm:$0xf]  ;;  %v3109_v49 = vor.u32 %v3726_v41, %v3106_v43  ;;  %v3581_v41 = vld [vmem:[#allocation5 + $0xf4] sm:$0xf0] }
  0x7c   :  { %v3362_v47 = vld [vmem:[#allocation5 + $0x790] sm:$0xf0]  ;;  %v3237_v50 = vor.u32 %v3758_v44, %v3234_v45  ;;  %v3690_v51 = vld [vmem:[#allocation5 + $0x464] sm:$0xf]  ;;  %v3613_v44 = vld [vmem:[#allocation5 + $0x1f4] sm:$0xf0] }
  0x7d   :  { %1799 = vmatpush.bf16.msrb.mxu0 %v3013_v19  ;;  %1812 = vmatpush.bf16.msrb.mxu1 %v3141_v20  ;;  %v2962_v52 = vld [vmem:[#allocation5 + $0x470] sm:$0xf0]  ;;  %v3722_v53 = vld [vmem:[#allocation5 + $0x564] sm:$0xf]  ;;  %v3365_v54 = vor.u32 %v3790_v46, %v3362_v47  ;;  %v2776_v45 = vld [vmem:[#allocation5 + $0x2e8] sm:$0xf] }
  0x7e   :  { %1825 = vmatpush.bf16.msrb.mxu2 %v3269_v21  ;;  %v3090_v55 = vld [vmem:[#allocation5 + $0x570] sm:$0xf0]  ;;  %v3754_v56 = vld [vmem:[#allocation5 + $0x664] sm:$0xf]  ;;  %v2965_v60 = vor.u32 %v3690_v51, %v2962_v52  ;;  %v3645_v46 = vld [vmem:[#allocation5 + $0x2f4] sm:$0xf0]  ;;  %v2521_v52 = vor.u32 %v3581_v41, %v2520_v39 }
  0x7f   :  { %1838 = vmatpush.bf16.msrb.mxu3 %v3397_v26  ;;  %v3218_v57 = vld [vmem:[#allocation5 + $0x670] sm:$0xf0]  ;;  %v3786_v58 = vld [vmem:[#allocation5 + $0x764] sm:$0xf]  ;;  %v3093_v61 = vor.u32 %v3722_v53, %v3090_v55  ;;  %v2504_v55 = vld [vmem:[#allocation5 + $0xc8] sm:$0xf] }
  0x80   :  { %v3346_v59 = vld [vmem:[#allocation5 + $0x770] sm:$0xf0]  ;;  %v3221_v62 = vor.u32 %v3754_v56, %v3218_v57  ;;  %v3686_v63 = vld [vmem:[#allocation5 + $0x444] sm:$0xf]  ;;  %v3577_v56 = vld [vmem:[#allocation5 + $0xd4] sm:$0xf0] }
  0x81   :  { %1800 = vmatpush.bf16.msrb.mxu0 %v2997_v32  ;;  %1813 = vmatpush.bf16.msrb.mxu1 %v3125_v33  ;;  %v2946_v0 = vld [vmem:[#allocation5 + $0x450] sm:$0xf0]  ;;  %v3718_v1 = vld [vmem:[#allocation5 + $0x544] sm:$0xf]  ;;  %v3349_v2 = vor.u32 %v3786_v58, %v3346_v59  ;;  %v2632_v57 = vld [vmem:[#allocation5 + $0x1c8] sm:$0xf] }
  0x82   :  { %1826 = vmatpush.bf16.msrb.mxu2 %v3253_v35  ;;  %v3074_v3 = vld [vmem:[#allocation5 + $0x550] sm:$0xf0]  ;;  %v3750_v4 = vld [vmem:[#allocation5 + $0x644] sm:$0xf]  ;;  %v2949_v10 = vor.u32 %v3686_v63, %v2946_v0  ;;  %v3609_v59 = vld [vmem:[#allocation5 + $0x1d4] sm:$0xf0]  ;;  %v2505_v0 = vor.u32 %v3577_v56, %v2504_v55 }
  0x83   :  { %1839 = vmatpush.bf16.msrb.mxu3 %v3381_v42  ;;  %v3202_v5 = vld [vmem:[#allocation5 + $0x650] sm:$0xf0]  ;;  %v3782_v6 = vld [vmem:[#allocation5 + $0x744] sm:$0xf]  ;;  %v3077_v11 = vor.u32 %v3718_v1, %v3074_v3  ;;  %v2648_v42 = vld [vmem:[#allocation5 + $0x1e8] sm:$0xf]  ;;  %v2633_v1 = vor.u32 %v3609_v59, %v2632_v57 }
  0x84   :  { %v3330_v7 = vld [vmem:[#allocation5 + $0x750] sm:$0xf0]  ;;  %v3205_v12 = vor.u32 %v3750_v4, %v3202_v5  ;;  %v3682_v13 = vld [vmem:[#allocation5 + $0x424] sm:$0xf]  ;;  %v2649_v53 = vor.u32 %v3613_v44, %v2648_v42  ;;  %v3673_v63 = vld [vmem:[#allocation5 + $0x3d4] sm:$0xf0] }
  0x85   :  { %1801 = vmatpush.bf16.msrb.mxu0 %v2981_v48  ;;  %1814 = vmatpush.bf16.msrb.mxu1 %v3109_v49  ;;  %v2930_v14 = vld [vmem:[#allocation5 + $0x430] sm:$0xf0]  ;;  %v3714_v16 = vld [vmem:[#allocation5 + $0x524] sm:$0xf]  ;;  %v3333_v17 = vor.u32 %v3782_v6, %v3330_v7  ;;  %v2904_v49 = vld [vmem:[#allocation5 + $0x3e8] sm:$0xf] }
  0x86   :  { %1827 = vmatpush.bf16.msrb.mxu2 %v3237_v50  ;;  %v3058_v18 = vld [vmem:[#allocation5 + $0x530] sm:$0xf0]  ;;  %v3746_v19 = vld [vmem:[#allocation5 + $0x624] sm:$0xf]  ;;  %v2933_v23 = vor.u32 %v3682_v13, %v2930_v14  ;;  %v3677_v50 = vld [vmem:[#allocation5 + $0x3f4] sm:$0xf0] }
  0x87   :  { %1840 = vmatpush.bf16.msrb.mxu3 %v3365_v54  ;;  %v3186_v20 = vld [vmem:[#allocation5 + $0x630] sm:$0xf0]  ;;  %v3778_v21 = vld [vmem:[#allocation5 + $0x724] sm:$0xf]  ;;  %v3061_v27 = vor.u32 %v3714_v16, %v3058_v18  ;;  %v2777_v54 = vor.u32 %v3645_v46, %v2776_v45  ;;  %v2905_v58 = vor.u32 %v3677_v50, %v2904_v49  ;;  %v2488_v3 = vld [vmem:[#allocation5 + $0xa8] sm:$0xf] }
  0x88   :  { %v3314_v22 = vld [vmem:[#allocation5 + $0x730] sm:$0xf0]  ;;  %v3678_v24 = vld [vmem:[#allocation5 + $0x404] sm:$0xf]  ;;  %v3189_v28 = vor.u32 %v3746_v19, %v3186_v20  ;;  %v3573_v4 = vld [vmem:[#allocation5 + $0xb4] sm:$0xf0] }
  0x89   :  { %1802 = vmatpush.bf16.msrb.mxu0 %v2965_v60  ;;  %1815 = vmatpush.bf16.msrb.mxu1 %v3093_v61  ;;  %v2914_v26 = vld [vmem:[#allocation5 + $0x410] sm:$0xf0]  ;;  %v3710_v29 = vld [vmem:[#allocation5 + $0x504] sm:$0xf]  ;;  %v3317_v32 = vor.u32 %v3778_v21, %v3314_v22  ;;  %v2760_v60 = vld [vmem:[#allocation5 + $0x2c8] sm:$0xf]  ;;  %v2489_v14 = vor.u32 %v3573_v4, %v2488_v3 }
  0x8a   :  { %1828 = vmatpush.bf16.msrb.mxu2 %v3221_v62  ;;  %v3042_v30 = vld [vmem:[#allocation5 + $0x510] sm:$0xf0]  ;;  %v3742_v31 = vld [vmem:[#allocation5 + $0x604] sm:$0xf]  ;;  %v2917_v43 = vor.u32 %v3678_v24, %v2914_v26  ;;  %v3641_v61 = vld [vmem:[#allocation5 + $0x2d4] sm:$0xf0] }
  0x8b   :  { %1841 = vmatpush.bf16.msrb.mxu3 %v3349_v2  ;;  %v3170_v33 = vld [vmem:[#allocation5 + $0x610] sm:$0xf0]  ;;  %v3774_v35 = vld [vmem:[#allocation5 + $0x704] sm:$0xf]  ;;  %v3045_v47 = vor.u32 %v3710_v29, %v3042_v30  ;;  %v2888_v62 = vld [vmem:[#allocation5 + $0x3c8] sm:$0xf]  ;;  %v2761_v2 = vor.u32 %v3641_v61, %v2760_v60 }
  0x8c   :  { %v3298_v36 = vld [vmem:[#allocation5 + $0x710] sm:$0xf0]  ;;  %v3173_v48 = vor.u32 %v3742_v31, %v3170_v33  ;;  %v2616_v5 = vld [vmem:[#allocation5 + $0x1a8] sm:$0xf]  ;;  %v2889_v6 = vor.u32 %v3673_v63, %v2888_v62  ;;  %v3605_v7 = vld [vmem:[#allocation5 + $0x1b4] sm:$0xf0] }
  0x8d   :  { %1803 = vmatpush.bf16.msrb.mxu0 %v2949_v10  ;;  %1816 = vmatpush.bf16.msrb.mxu1 %v3077_v11  ;;  %v3301_v51 = vor.u32 %v3774_v35, %v3298_v36  ;;  %v2744_v10 = vld [vmem:[#allocation5 + $0x2a8] sm:$0xf]  ;;  %v3637_v11 = vld [vmem:[#allocation5 + $0x2b4] sm:$0xf0]  ;;  %v2617_v16 = vor.u32 %v3605_v7, %v2616_v5 }
  0x8e   :  { %1829 = vmatpush.bf16.msrb.mxu2 %v3205_v12  ;;  %v2872_v12 = vld [vmem:[#allocation5 + $0x3a8] sm:$0xf]  ;;  %v3669_v13 = vld [vmem:[#allocation5 + $0x3b4] sm:$0xf0] }
  0x8f   :  { %1842 = vmatpush.bf16.msrb.mxu3 %v3333_v17  ;;  %v2745_v17 = vor.u32 %v3637_v11, %v2744_v10  ;;  %v2472_v18 = vld [vmem:[#allocation5 + $0x88] sm:$0xf]  ;;  %v3569_v19 = vld [vmem:[#allocation5 + $0x94] sm:$0xf0]  ;;  %v2873_v21 = vor.u32 %v3669_v13, %v2872_v12 }
  0x90   :  { %v2600_v20 = vld [vmem:[#allocation5 + $0x188] sm:$0xf]  ;;  %v3601_v22 = vld [vmem:[#allocation5 + $0x194] sm:$0xf0] }
  0x91   :  { %1804 = vmatpush.bf16.msrb.mxu0 %v2933_v23  ;;  %1817 = vmatpush.bf16.msrb.mxu1 %v3061_v27  ;;  %v2728_v23 = vld [vmem:[#allocation5 + $0x288] sm:$0xf]  ;;  %v3633_v24 = vld [vmem:[#allocation5 + $0x294] sm:$0xf0]  ;;  %v2601_v29 = vor.u32 %v3601_v22, %v2600_v20 }
  0x92   :  { %1830 = vmatpush.bf16.msrb.mxu2 %v3189_v28  ;;  %v2856_v26 = vld [vmem:[#allocation5 + $0x388] sm:$0xf]  ;;  %v3665_v27 = vld [vmem:[#allocation5 + $0x394] sm:$0xf0]  ;;  %v2473_v28 = vor.u32 %v3569_v19, %v2472_v18  ;;  %v2729_v30 = vor.u32 %v3633_v24, %v2728_v23 }
  0x93   :  { %1843 = vmatpush.bf16.msrb.mxu3 %v3317_v32  ;;  %v2456_v31 = vld [vmem:[#allocation5 + $0x68] sm:$0xf]  ;;  %v3565_v32 = vld [vmem:[#allocation5 + $0x74] sm:$0xf0]  ;;  %v2857_v35 = vor.u32 %v3665_v27, %v2856_v26 }
  0x94   :  { %v2584_v33 = vld [vmem:[#allocation5 + $0x168] sm:$0xf]  ;;  %v3597_v36 = vld [vmem:[#allocation5 + $0x174] sm:$0xf0]  ;;  %v2457_v44 = vor.u32 %v3565_v32, %v2456_v31 }
  0x95   :  { %1805 = vmatpush.bf16.msrb.mxu0 %v2917_v43  ;;  %1818 = vmatpush.bf16.msrb.mxu1 %v3045_v47  ;;  %v2712_v39 = vld [vmem:[#allocation5 + $0x268] sm:$0xf]  ;;  %v3629_v41 = vld [vmem:[#allocation5 + $0x274] sm:$0xf0]  ;;  %v2585_v45 = vor.u32 %v3597_v36, %v2584_v33 }
  0x96   :  { %1831 = vmatpush.bf16.msrb.mxu2 %v3173_v48  ;;  %v2840_v42 = vld [vmem:[#allocation5 + $0x368] sm:$0xf]  ;;  %v3661_v43 = vld [vmem:[#allocation5 + $0x374] sm:$0xf0]  ;;  %v2713_v46 = vor.u32 %v3629_v41, %v2712_v39 }
  0x97   :  { %1844 = vmatpush.bf16.msrb.mxu3 %v3301_v51  ;;  %v2440_v47 = vld [vmem:[#allocation5 + $0x48] sm:$0xf]  ;;  %v3561_v48 = vld [vmem:[#allocation5 + $0x54] sm:$0xf0]  ;;  %v2841_v50 = vor.u32 %v3661_v43, %v2840_v42 }
  0x98   :  { %1806 = vmatmul.bf16.vlgmr.msrb.gmra.mxu0 %v4041_v37  ;;  %1819 = vmatmul.bf16.vlgmr.msrb.gmra.mxu1 %v4045_v40  ;;  %v2568_v49 = vld [vmem:[#allocation5 + $0x148] sm:$0xf]  ;;  %v3593_v51 = vld [vmem:[#allocation5 + $0x154] sm:$0xf0]  ;;  %v2441_v56 = vor.u32 %v3561_v48, %v2440_v47 }
  0x99   :  { %1850 = vmatpush.bf16.msra.mxu0 %v2521_v52  ;;  %1863 = vmatpush.bf16.msra.mxu1 %v2649_v53  ;;  %v2696_v52 = vld [vmem:[#allocation5 + $0x248] sm:$0xf]  ;;  %v3625_v53 = vld [vmem:[#allocation5 + $0x254] sm:$0xf0]  ;;  %v2569_v57 = vor.u32 %v3593_v51, %v2568_v49 }
  0x9a   :  { %1876 = vmatpush.bf16.msra.mxu2 %v2777_v54  ;;  %1845 = vmatmul.bf16.vlgmr.msrb.gmra.mxu3 %v4043_v38  ;;  %v2824_v54 = vld [vmem:[#allocation5 + $0x348] sm:$0xf]  ;;  %v3657_v55 = vld [vmem:[#allocation5 + $0x354] sm:$0xf0] }
  0x9b   :  { %1889 = vmatpush.bf16.msra.mxu3 %v2905_v58  ;;  %1832 = vmatmul.bf16.vlgmr.msrb.gmra.mxu2 %v4039_v34  ;;  %v2697_v58 = vor.u32 %v3625_v53, %v2696_v52  ;;  %v2424_v59 = vld [vmem:[#allocation5 + $0x28] sm:$0xf]  ;;  %v3557_v60 = vld [vmem:[#allocation5 + $0x34] sm:$0xf0]  ;;  %v2825_v62 = vor.u32 %v3657_v55, %v2824_v54 }
  0x9c   :  { %v2552_v61 = vld [vmem:[#allocation5 + $0x128] sm:$0xf]  ;;  %v3589_v63 = vld [vmem:[#allocation5 + $0x134] sm:$0xf0]  ;;  %v2425_v4 = vor.u32 %v3557_v60, %v2424_v59 }
  0x9d   :  { %1851 = vmatpush.bf16.msra.mxu0 %v2505_v0  ;;  %1864 = vmatpush.bf16.msra.mxu1 %v2633_v1  ;;  %v2680_v0 = vld [vmem:[#allocation5 + $0x228] sm:$0xf]  ;;  %v3621_v1 = vld [vmem:[#allocation5 + $0x234] sm:$0xf0]  ;;  %v2553_v7 = vor.u32 %v3589_v63, %v2552_v61 }
  0x9e   :  { %1877 = vmatpush.bf16.msra.mxu2 %v2761_v2  ;;  %v2808_v2 = vld [vmem:[#allocation5 + $0x328] sm:$0xf]  ;;  %v3653_v3 = vld [vmem:[#allocation5 + $0x334] sm:$0xf0]  ;;  %v2681_v10 = vor.u32 %v3621_v1, %v2680_v0 }
  0x9f   :  { %1890 = vmatpush.bf16.msra.mxu3 %v2889_v6  ;;  %v2408_v5 = vld [vmem:[#allocation5 + $0x8] sm:$0xf]  ;;  %v3553_v6 = vld [vmem:[#allocation5 + $0x14] sm:$0xf0] }
  0xa0   :  { %v2536_v11 = vld [vmem:[#allocation5 + $0x108] sm:$0xf]  ;;  %v3585_v12 = vld [vmem:[#allocation5 + $0x114] sm:$0xf0]  ;;  %v2409_v22 = vor.u32 %v3553_v6, %v2408_v5  ;;  %v4063_v6 = vld [vmem:[#allocation7] sm:$0xf] }
  0xa1   :  { %1852 = vmatpush.bf16.msra.mxu0 %v2489_v14  ;;  %1865 = vmatpush.bf16.msra.mxu1 %v2617_v16  ;;  %v2664_v13 = vld [vmem:[#allocation5 + $0x208] sm:$0xf]  ;;  %v2809_v14 = vor.u32 %v3653_v3, %v2808_v2  ;;  %v3617_v16 = vld [vmem:[#allocation5 + $0x214] sm:$0xf0]  ;;  %v2537_v27 = vor.u32 %v3585_v12, %v2536_v11 }
  0xa2   :  { %1878 = vmatpush.bf16.msra.mxu2 %v2745_v17  ;;  %v2792_v17 = vld [vmem:[#allocation5 + $0x308] sm:$0xf]  ;;  %v3649_v18 = vld [vmem:[#allocation5 + $0x314] sm:$0xf0] }
  0xa3   :  { %1891 = vmatpush.bf16.msra.mxu3 %v2873_v21  ;;  %v3032_v19 = vld [vmem:[#allocation5 + $0x4e8] sm:$0xf]  ;;  %v3709_v20 = vld [vmem:[#allocation5 + $0x4f4] sm:$0xf0]  ;;  %v2793_v31 = vor.u32 %v3649_v18, %v2792_v17  ;;  %v354_v18 = vperm.slane %v4063_v6, 0 }
  0xa4   :  { %v3160_v21 = vld [vmem:[#allocation5 + $0x5e8] sm:$0xf]  ;;  %v3741_v23 = vld [vmem:[#allocation5 + $0x5f4] sm:$0xf0]  ;;  %v3033_v32 = vor.u32 %v3709_v20, %v3032_v19 }
  0xa5   :  { %1853 = vmatpush.bf16.msra.mxu0 %v2473_v28  ;;  %1866 = vmatpush.bf16.msra.mxu1 %v2601_v29  ;;  %v3288_v24 = vld [vmem:[#allocation5 + $0x6e8] sm:$0xf]  ;;  %v3773_v26 = vld [vmem:[#allocation5 + $0x6f4] sm:$0xf0]  ;;  %v2665_v28 = vor.u32 %v3617_v16, %v2664_v13  ;;  %v3161_v33 = vor.u32 %v3741_v23, %v3160_v21 }
  0xa6   :  { %1879 = vmatpush.bf16.msra.mxu2 %v2729_v30  ;;  %v3416_v29 = vld [vmem:[#allocation5 + $0x7e8] sm:$0xf]  ;;  %v3805_v30 = vld [vmem:[#allocation5 + $0x7f4] sm:$0xf0] }
  0xa7   :  { %1892 = vmatpush.bf16.msra.mxu3 %v2857_v35  ;;  %v3289_v35 = vor.u32 %v3773_v26, %v3288_v24  ;;  %v3016_v36 = vld [vmem:[#allocation5 + $0x4c8] sm:$0xf]  ;;  %v3705_v39 = vld [vmem:[#allocation5 + $0x4d4] sm:$0xf0]  ;;  %v3417_v42 = vor.u32 %v3805_v30, %v3416_v29 }
  0xa8   :  { %v3144_v41 = vld [vmem:[#allocation5 + $0x5c8] sm:$0xf]  ;;  %v3737_v43 = vld [vmem:[#allocation5 + $0x5d4] sm:$0xf0]  ;;  %v3017_v48 = vor.u32 %v3705_v39, %v3016_v36 }
  0xa9   :  { %1854 = vmatpush.bf16.msra.mxu0 %v2457_v44  ;;  %1867 = vmatpush.bf16.msra.mxu1 %v2585_v45  ;;  %v3272_v44 = vld [vmem:[#allocation5 + $0x6c8] sm:$0xf]  ;;  %v3769_v45 = vld [vmem:[#allocation5 + $0x6d4] sm:$0xf0]  ;;  %v3145_v49 = vor.u32 %v3737_v43, %v3144_v41 }
  0xaa   :  { %1880 = vmatpush.bf16.msra.mxu2 %v2713_v46  ;;  %v3400_v46 = vld [vmem:[#allocation5 + $0x7c8] sm:$0xf]  ;;  %v3801_v47 = vld [vmem:[#allocation5 + $0x7d4] sm:$0xf0] }
  0xab   :  { %1893 = vmatpush.bf16.msra.mxu3 %v2841_v50  ;;  %v3273_v50 = vor.u32 %v3769_v45, %v3272_v44  ;;  %v3000_v51 = vld [vmem:[#allocation5 + $0x4a8] sm:$0xf]  ;;  %v3701_v52 = vld [vmem:[#allocation5 + $0x4b4] sm:$0xf0]  ;;  %v3401_v54 = vor.u32 %v3801_v47, %v3400_v46 }
  0xac   :  { %v3128_v53 = vld [vmem:[#allocation5 + $0x5a8] sm:$0xf]  ;;  %v3733_v55 = vld [vmem:[#allocation5 + $0x5b4] sm:$0xf0]  ;;  %v3001_v60 = vor.u32 %v3701_v52, %v3000_v51 }
  0xad   :  { %1855 = vmatpush.bf16.msra.mxu0 %v2441_v56  ;;  %1868 = vmatpush.bf16.msra.mxu1 %v2569_v57  ;;  %v3256_v56 = vld [vmem:[#allocation5 + $0x6a8] sm:$0xf]  ;;  %v3765_v57 = vld [vmem:[#allocation5 + $0x6b4] sm:$0xf0] }
  0xae   :  { %1881 = vmatpush.bf16.msra.mxu2 %v2697_v58  ;;  %v3384_v58 = vld [vmem:[#allocation5 + $0x7a8] sm:$0xf]  ;;  %v3797_v59 = vld [vmem:[#allocation5 + $0x7b4] sm:$0xf0]  ;;  %v3257_v63 = vor.u32 %v3765_v57, %v3256_v56 }
  0xaf   :  { %1894 = vmatpush.bf16.msra.mxu3 %v2825_v62  ;;  %v2984_v61 = vld [vmem:[#allocation5 + $0x488] sm:$0xf]  ;;  %v3129_v62 = vor.u32 %v3733_v55, %v3128_v53  ;;  %v3697_v0 = vld [vmem:[#allocation5 + $0x494] sm:$0xf0]  ;;  %v3385_v3 = vor.u32 %v3797_v59, %v3384_v58 }
  0xb0   :  { %v3112_v1 = vld [vmem:[#allocation5 + $0x588] sm:$0xf]  ;;  %v3729_v2 = vld [vmem:[#allocation5 + $0x594] sm:$0xf0]  ;;  %v2985_v11 = vor.u32 %v3697_v0, %v2984_v61 }
  0xb1   :  { %1856 = vmatpush.bf16.msra.mxu0 %v2425_v4  ;;  %1869 = vmatpush.bf16.msra.mxu1 %v2553_v7  ;;  %v3240_v4 = vld [vmem:[#allocation5 + $0x688] sm:$0xf]  ;;  %v3761_v5 = vld [vmem:[#allocation5 + $0x694] sm:$0xf0]  ;;  %v3113_v13 = vor.u32 %v3729_v2, %v3112_v1 }
  0xb2   :  { %1882 = vmatpush.bf16.msra.mxu2 %v2681_v10  ;;  %v3368_v7 = vld [vmem:[#allocation5 + $0x788] sm:$0xf]  ;;  %v3793_v10 = vld [vmem:[#allocation5 + $0x794] sm:$0xf0] }
  0xb3   :  { %1895 = vmatpush.bf16.msra.mxu3 %v2809_v14  ;;  %v2968_v12 = vld [vmem:[#allocation5 + $0x468] sm:$0xf]  ;;  %v3241_v14 = vor.u32 %v3761_v5, %v3240_v4  ;;  %v3693_v16 = vld [vmem:[#allocation5 + $0x474] sm:$0xf0]  ;;  %v3369_v19 = vor.u32 %v3793_v10, %v3368_v7 }
  0xb4   :  { %v3096_v17 = vld [vmem:[#allocation5 + $0x568] sm:$0xf]  ;;  %v3725_v20 = vld [vmem:[#allocation5 + $0x574] sm:$0xf0]  ;;  %v2969_v26 = vor.u32 %v3693_v16, %v2968_v12  ;;  %v1664_v45 = vpop.f32.mrf.mxu1  ;;  %v2522_v16 = vld [vmem:[#allocation5 + $0xf8] sm:$0xf0] }
  0xb5   :  { %1857 = vmatpush.bf16.msra.mxu0 %v2409_v22  ;;  %1870 = vmatpush.bf16.msra.mxu1 %v2537_v27  ;;  %v3224_v21 = vld [vmem:[#allocation5 + $0x668] sm:$0xf]  ;;  %v3757_v22 = vld [vmem:[#allocation5 + $0x674] sm:$0xf0] }
  0xb6   :  { %1883 = vmatpush.bf16.msra.mxu2 %v2665_v28  ;;  %v3352_v23 = vld [vmem:[#allocation5 + $0x768] sm:$0xf]  ;;  %v3789_v24 = vld [vmem:[#allocation5 + $0x774] sm:$0xf0]  ;;  %v3097_v28 = vor.u32 %v3725_v20, %v3096_v17  ;;  %v3225_v29 = vor.u32 %v3757_v22, %v3224_v21  ;;  %v3611_v17 = vld [vmem:[#allocation5 + $0x1ec] sm:$0xf] }
  0xb7   :  { %1896 = vmatpush.bf16.msra.mxu3 %v2793_v31  ;;  %v2952_v30 = vld [vmem:[#allocation5 + $0x448] sm:$0xf]  ;;  %v3689_v31 = vld [vmem:[#allocation5 + $0x454] sm:$0xf0]  ;;  %v3643_v20 = vld [vmem:[#allocation5 + $0x2ec] sm:$0xf] }
  0xb8   :  { %1858 = vmatmul.bf16.vlgmr.msra.gmra.mxu0 %v4029_v9  ;;  %1871 = vmatmul.bf16.vlgmr.msra.gmra.mxu1 %v4036_v25  ;;  %v3721_v36 = vld [vmem:[#allocation5 + $0x554] sm:$0xf0]  ;;  %v3208_v39 = vld [vmem:[#allocation5 + $0x648] sm:$0xf]  ;;  %v2953_v44 = vor.u32 %v3689_v31, %v2952_v30  ;;  %v2778_v21 = vld [vmem:[#allocation5 + $0x2f8] sm:$0xf0] }
  0xb9   :  { %1902 = vmatpush.bf16.msrb.mxu0 %v3033_v32  ;;  %1915 = vmatpush.bf16.msrb.mxu1 %v3161_v33  ;;  %v3080_v32 = vld [vmem:[#allocation5 + $0x548] sm:$0xf]  ;;  %v3753_v41 = vld [vmem:[#allocation5 + $0x654] sm:$0xf0] }
  0xba   :  { %1928 = vmatpush.bf16.msrb.mxu2 %v3289_v35  ;;  %1897 = vmatmul.bf16.vlgmr.msra.gmra.mxu3 %v4031_v15  ;;  %v3353_v35 = vor.u32 %v3789_v24, %v3352_v23  ;;  %v3785_v43 = vld [vmem:[#allocation5 + $0x754] sm:$0xf0]  ;;  %v3081_v46 = vor.u32 %v3721_v36, %v3080_v32  ;;  %v3209_v47 = vor.u32 %v3753_v41, %v3208_v39  ;;  %v3320_v57 = vld [vmem:[#allocation5 + $0x728] sm:$0xf]  ;;  %v3607_v36 = vld [vmem:[#allocation5 + $0x1cc] sm:$0xf] }
  0xbb   :  { %1941 = vmatpush.bf16.msrb.mxu3 %v3417_v42  ;;  %1884 = vmatmul.bf16.vlgmr.msra.gmra.mxu2 %v4027_v8  ;;  %v3336_v42 = vld [vmem:[#allocation5 + $0x748] sm:$0xf]  ;;  %v3717_v53 = vld [vmem:[#allocation5 + $0x534] sm:$0xf0]  ;;  %v2781_v32 = vor.u32 %v3643_v20, %v2778_v21 }
  0xbc   :  { %v3337_v52 = vor.u32 %v3785_v43, %v3336_v42  ;;  %v3749_v55 = vld [vmem:[#allocation5 + $0x634] sm:$0xf0]  ;;  %v3176_v5 = vld [vmem:[#allocation5 + $0x608] sm:$0xf]  ;;  %v1666_v22 = vpop.f32.mrf.mxu1  ;;  %v2634_v42 = vld [vmem:[#allocation5 + $0x1d8] sm:$0xf0] }
  0xbd   :  { %1903 = vmatpush.bf16.msrb.mxu0 %v3017_v48  ;;  %1916 = vmatpush.bf16.msrb.mxu1 %v3145_v49  ;;  %v2936_v48 = vld [vmem:[#allocation5 + $0x428] sm:$0xf]  ;;  %v3685_v49 = vld [vmem:[#allocation5 + $0x434] sm:$0xf0]  ;;  %v3639_v43 = vld [vmem:[#allocation5 + $0x2cc] sm:$0xf] }
  0xbe   :  { %1929 = vmatpush.bf16.msrb.mxu2 %v3273_v50  ;;  %v3064_v50 = vld [vmem:[#allocation5 + $0x528] sm:$0xf]  ;;  %v3781_v58 = vld [vmem:[#allocation5 + $0x734] sm:$0xf0]  ;;  %v2937_v61 = vor.u32 %v3685_v49, %v2936_v48  ;;  %v2637_v48 = vor.u32 %v3607_v36, %v2634_v42  ;;  %v2586_v22 = vld [vmem:[#allocation5 + $0x178] sm:$0xf0] }
  0xbf   :  { %1942 = vmatpush.bf16.msrb.mxu3 %v3401_v54  ;;  %v3192_v54 = vld [vmem:[#allocation5 + $0x628] sm:$0xf]  ;;  %v3065_v1 = vor.u32 %v3717_v53, %v3064_v50  ;;  %v3713_v4 = vld [vmem:[#allocation5 + $0x514] sm:$0xf0]  ;;  %v3321_v10 = vor.u32 %v3781_v58, %v3320_v57  ;;  %v3571_v50 = vld [vmem:[#allocation5 + $0xac] sm:$0xf] }
  0xc0   :  { %v3193_v2 = vor.u32 %v3749_v55, %v3192_v54  ;;  %v3304_v12 = vld [vmem:[#allocation5 + $0x708] sm:$0xf]  ;;  %v2618_v54 = vld [vmem:[#allocation5 + $0x1b8] sm:$0xf0]  ;;  %v3635_v55 = vld [vmem:[#allocation5 + $0x2ac] sm:$0xf] }
  0xc1   :  { %1904 = vmatpush.bf16.msrb.mxu0 %v3001_v60  ;;  %1917 = vmatpush.bf16.msrb.mxu1 %v3129_v62  ;;  %v1651_v27 = vpop.f32.mrf.mxu0  ;;  %v1690_v60 = vpop.f32.mrf.mxu3  ;;  %v2920_v62 = vld [vmem:[#allocation5 + $0x408] sm:$0xf]  ;;  %v3667_v57 = vld [vmem:[#allocation5 + $0x3ac] sm:$0xf]  ;;  %v2874_v58 = vld [vmem:[#allocation5 + $0x3b8] sm:$0xf0] }
  0xc2   :  { %1930 = vmatpush.bf16.msrb.mxu2 %v3257_v63  ;;  %v1652_v33 = vadd.f32 %v1651_v27, %v354_v18  ;;  %v3681_v63 = vld [vmem:[#allocation5 + $0x414] sm:$0xf0]  ;;  %v2906_v27 = vld [vmem:[#allocation5 + $0x3f8] sm:$0xf0] }
  0xc3   :  { %1943 = vmatpush.bf16.msrb.mxu3 %v3385_v3  ;;  %v3048_v3 = vld [vmem:[#allocation5 + $0x508] sm:$0xf]  ;;  %v2921_v18 = vor.u32 %v3681_v63, %v2920_v62  ;;  %v3567_v62 = vld [vmem:[#allocation5 + $0x8c] sm:$0xf]  ;;  %v2474_v63 = vld [vmem:[#allocation5 + $0x98] sm:$0xf0] }
  0xc4   :  { %v1665_v51 = vadd.f32 %v1664_v45, %v1652_v33  ;;  %v3049_v23 = vor.u32 %v3713_v4, %v3048_v3  ;;  %v3575_v33 = vld [vmem:[#allocation5 + $0xcc] sm:$0xf]  ;;  %v2730_v4 = vld [vmem:[#allocation5 + $0x298] sm:$0xf0] }
  0xc5   :  { %1905 = vmatpush.bf16.msrb.mxu0 %v2985_v11  ;;  %1918 = vmatpush.bf16.msrb.mxu1 %v3113_v13  ;;  %v3745_v11 = vld [vmem:[#allocation5 + $0x614] sm:$0xf0]  ;;  %v3671_v45 = vld [vmem:[#allocation5 + $0x3cc] sm:$0xf]  ;;  %v2698_v42 = vld [vmem:[#allocation5 + $0x258] sm:$0xf0] }
  0xc6   :  { %1931 = vmatpush.bf16.msrb.mxu2 %v3241_v14  ;;  %v1677_v56 = vpop.f32.mrf.mxu2  ;;  %v3777_v13 = vld [vmem:[#allocation5 + $0x714] sm:$0xf0]  ;;  %v3579_v14 = vld [vmem:[#allocation5 + $0xec] sm:$0xf]  ;;  %v3177_v24 = vor.u32 %v3745_v11, %v3176_v5  ;;  %v2477_v11 = vor.u32 %v3567_v62, %v2474_v63 }
  0xc7   :  { %1944 = vmatpush.bf16.msrb.mxu3 %v3369_v19  ;;  %v1678_v59 = vadd.f32 %v1677_v56, %v1665_v51  ;;  %v2650_v19 = vld [vmem:[#allocation5 + $0x1f8] sm:$0xf0]  ;;  %v3631_v3 = vld [vmem:[#allocation5 + $0x28c] sm:$0xf] }
  0xc8   :  { %v2653_v31 = vor.u32 %v3611_v17, %v2650_v19  ;;  %v2490_v51 = vld [vmem:[#allocation5 + $0xb8] sm:$0xf0]  ;;  %v3663_v5 = vld [vmem:[#allocation5 + $0x38c] sm:$0xf] }
  0xc9   :  { %1906 = vmatpush.bf16.msrb.mxu0 %v2969_v26  ;;  %1919 = vmatpush.bf16.msrb.mxu1 %v3097_v28  ;;  %v1653_v0 = vpop.f32.mrf.mxu0  ;;  %v4066_v7 = vadd.f32 %v1690_v60, %v1678_v59  ;;  %v3675_v26 = vld [vmem:[#allocation5 + $0x3ec] sm:$0xf]  ;;  %v3305_v28 = vor.u32 %v3777_v13, %v3304_v12  ;;  %v1692_v39 = vpop.f32.mrf.mxu3  ;;  %v2746_v56 = vld [vmem:[#allocation5 + $0x2b8] sm:$0xf0]  ;;  %v2493_v59 = vor.u32 %v3571_v50, %v2490_v51 }
  0xca   :  { %1932 = vmatpush.bf16.msrb.mxu2 %v3225_v29  ;;  %v2525_v29 = vor.u32 %v3579_v14, %v2522_v16  ;;  %v2909_v41 = vor.u32 %v3675_v26, %v2906_v27  ;;  %v3599_v0 = vld [vmem:[#allocation5 + $0x18c] sm:$0xf]  ;;  %v2733_v14 = vor.u32 %v3631_v3, %v2730_v4  ;;  %v2458_v17 = vld [vmem:[#allocation5 + $0x78] sm:$0xf0] }
  0xcb   :  { %1945 = vmatpush.bf16.msrb.mxu3 %v3353_v35  ;;  %v2506_v35 = vld [vmem:[#allocation5 + $0xd8] sm:$0xf0]  ;;  %v3563_v16 = vld [vmem:[#allocation5 + $0x6c] sm:$0xf] }
  0xcc   :  { %v3659_v26 = vld [vmem:[#allocation5 + $0x36c] sm:$0xf]  ;;  %v2842_v27 = vld [vmem:[#allocation5 + $0x378] sm:$0xf0] }
  0xcd   :  { %1907 = vmatpush.bf16.msrb.mxu0 %v2953_v44  ;;  %1920 = vmatpush.bf16.msrb.mxu1 %v3081_v46  ;;  %v2762_v44 = vld [vmem:[#allocation5 + $0x2d8] sm:$0xf0]  ;;  %v3551_v63 = vld [vmem:[#allocation5 + $0xc] sm:$0xf] }
  0xce   :  { %1933 = vmatpush.bf16.msrb.mxu2 %v3209_v47  ;;  %v1679_v30 = vpop.f32.mrf.mxu2  ;;  %v2890_v46 = vld [vmem:[#allocation5 + $0x3d8] sm:$0xf0]  ;;  %v2509_v47 = vor.u32 %v3575_v33, %v2506_v35  ;;  %v2765_v49 = vor.u32 %v3639_v43, %v2762_v44  ;;  %v3591_v35 = vld [vmem:[#allocation5 + $0x14c] sm:$0xf] }
  0xcf   :  { %1946 = vmatpush.bf16.msrb.mxu3 %v3337_v52  ;;  %v3603_v52 = vld [vmem:[#allocation5 + $0x1ac] sm:$0xf]  ;;  %v2893_v53 = vor.u32 %v3671_v45, %v2890_v46  ;;  %v2442_v33 = vld [vmem:[#allocation5 + $0x58] sm:$0xf0] }
  0xd0   :  { %v2621_v60 = vor.u32 %v3603_v52, %v2618_v54  ;;  %v2570_v39 = vld [vmem:[#allocation5 + $0x158] sm:$0xf0]  ;;  %v3655_v45 = vld [vmem:[#allocation5 + $0x34c] sm:$0xf] }
  0xd1   :  { %1908 = vmatpush.bf16.msrb.mxu0 %v2937_v61  ;;  %1921 = vmatpush.bf16.msrb.mxu1 %v3065_v1  ;;  %v2749_v61 = vor.u32 %v3635_v55, %v2746_v56  ;;  %v2877_v1 = vor.u32 %v3667_v57, %v2874_v58  ;;  %v2826_v46 = vld [vmem:[#allocation5 + $0x358] sm:$0xf0]  ;;  %v2573_v50 = vor.u32 %v3591_v35, %v2570_v39  ;;  %v3555_v52 = vld [vmem:[#allocation5 + $0x2c] sm:$0xf] }
  0xd2   :  { %1934 = vmatpush.bf16.msrb.mxu2 %v3193_v2  ;;  %v2602_v2 = vld [vmem:[#allocation5 + $0x198] sm:$0xf0]  ;;  %v3587_v54 = vld [vmem:[#allocation5 + $0x12c] sm:$0xf]  ;;  %v2829_v56 = vor.u32 %v3655_v45, %v2826_v46 }
  0xd3   :  { %1947 = vmatpush.bf16.msrb.mxu3 %v3321_v10  ;;  %v2858_v10 = vld [vmem:[#allocation5 + $0x398] sm:$0xf0]  ;;  %v2605_v13 = vor.u32 %v3599_v0, %v2602_v2  ;;  %v3619_v58 = vld [vmem:[#allocation5 + $0x22c] sm:$0xf] }
  0xd4   :  { %v2861_v21 = vor.u32 %v3663_v5, %v2858_v10  ;;  %v2554_v57 = vld [vmem:[#allocation5 + $0x138] sm:$0xf0]  ;;  %v3583_v3 = vld [vmem:[#allocation5 + $0x10c] sm:$0xf] }
  0xd5   :  { %1909 = vmatpush.bf16.msrb.mxu0 %v2921_v18  ;;  %1922 = vmatpush.bf16.msrb.mxu1 %v3049_v23  ;;  %v1703_v12 = vpop.f32.mrf.mxu0  ;;  %v3595_v18 = vld [vmem:[#allocation5 + $0x16c] sm:$0xf]  ;;  %v1716_v20 = vpop.f32.mrf.mxu1  ;;  %v2410_v0 = vld [vmem:[#allocation5 + $0x18] sm:$0xf0] }
  0xd6   :  { %1935 = vmatpush.bf16.msrb.mxu2 %v3177_v24  ;;  %v1704_v19 = vadd.f32 %v1703_v12, %v4066_v7  ;;  %v3627_v23 = vld [vmem:[#allocation5 + $0x26c] sm:$0xf]  ;;  %v2714_v24 = vld [vmem:[#allocation5 + $0x278] sm:$0xf0]  ;;  %v2589_v30 = vor.u32 %v3595_v18, %v2586_v22  ;;  %v2845_v7 = vor.u32 %v3659_v26, %v2842_v27 }
  0xd7   :  { %1948 = vmatpush.bf16.msrb.mxu3 %v3305_v28  ;;  %v2538_v4 = vld [vmem:[#allocation5 + $0x118] sm:$0xf0]  ;;  %v3615_v5 = vld [vmem:[#allocation5 + $0x20c] sm:$0xf] }
  0xd8   :  { %1910 = vmatmul.bf16.vlgmr.msrb.gmra.mxu0 %v4041_v37  ;;  %1923 = vmatmul.bf16.vlgmr.msrb.gmra.mxu1 %v4045_v40  ;;  %v1717_v28 = vadd.f32 %v1716_v20, %v1704_v19  ;;  %v2666_v12 = vld [vmem:[#allocation5 + $0x218] sm:$0xf0]  ;;  %v3739_v19 = vld [vmem:[#allocation5 + $0x5ec] sm:$0xf]  ;;  %v2413_v20 = vor.u32 %v3551_v63, %v2410_v0 }
  0xd9   :  { %1954 = vmatpush.bf16.msra.mxu0 %v2525_v29  ;;  %1967 = vmatpush.bf16.msra.mxu1 %v2653_v31  ;;  %v2461_v29 = vor.u32 %v3563_v16, %v2458_v17  ;;  %v2717_v31 = vor.u32 %v3627_v23, %v2714_v24  ;;  %v3707_v17 = vld [vmem:[#allocation5 + $0x4ec] sm:$0xf]  ;;  %v3034_v18 = vld [vmem:[#allocation5 + $0x4f8] sm:$0xf0]  ;;  %v2541_v24 = vor.u32 %v3583_v3, %v2538_v4 }
  0xda   :  { %1980 = vmatpush.bf16.msra.mxu2 %v2781_v32  ;;  %1949 = vmatmul.bf16.vlgmr.msrb.gmra.mxu3 %v4043_v38  ;;  %v3559_v32 = vld [vmem:[#allocation5 + $0x4c] sm:$0xf]  ;;  %v3290_v23 = vld [vmem:[#allocation5 + $0x6f8] sm:$0xf0]  ;;  %v2669_v26 = vor.u32 %v3615_v5, %v2666_v12 }
  0xdb   :  { %1993 = vmatpush.bf16.msra.mxu3 %v2909_v41  ;;  %1936 = vmatmul.bf16.vlgmr.msrb.gmra.mxu2 %v4039_v34  ;;  %v3623_v41 = vld [vmem:[#allocation5 + $0x24c] sm:$0xf]  ;;  %v3018_v35 = vld [vmem:[#allocation5 + $0x4d8] sm:$0xf0] }
  0xdc   :  { %v2701_v51 = vor.u32 %v3623_v41, %v2698_v42  ;;  %v3771_v22 = vld [vmem:[#allocation5 + $0x6ec] sm:$0xf]  ;;  %v3146_v39 = vld [vmem:[#allocation5 + $0x5d8] sm:$0xf0] }
  0xdd   :  { %1955 = vmatpush.bf16.msra.mxu0 %v2509_v47  ;;  %1968 = vmatpush.bf16.msra.mxu1 %v2637_v48  ;;  %v1742_v44 = vpop.f32.mrf.mxu3  ;;  %v2445_v47 = vor.u32 %v3559_v32, %v2442_v33  ;;  %v1718_v55 = vpop.f32.mrf.mxu1  ;;  %v3803_v27 = vld [vmem:[#allocation5 + $0x7ec] sm:$0xf]  ;;  %v3293_v32 = vor.u32 %v3771_v22, %v3290_v23  ;;  %v3274_v42 = vld [vmem:[#allocation5 + $0x6d8] sm:$0xf0] }
  0xde   :  { %1981 = vmatpush.bf16.msra.mxu2 %v2765_v49  ;;  %v1729_v36 = vpop.f32.mrf.mxu2  ;;  %v1705_v49 = vpop.f32.mrf.mxu0  ;;  %v3703_v33 = vld [vmem:[#allocation5 + $0x4cc] sm:$0xf]  ;;  %v3258_v55 = vld [vmem:[#allocation5 + $0x6b8] sm:$0xf0] }
  0xdf   :  { %1994 = vmatpush.bf16.msra.mxu3 %v2893_v53  ;;  %v1730_v43 = vadd.f32 %v1729_v36, %v1717_v28  ;;  %v2426_v53 = vld [vmem:[#allocation5 + $0x38] sm:$0xf0]  ;;  %v3735_v36 = vld [vmem:[#allocation5 + $0x5cc] sm:$0xf]  ;;  %v3021_v45 = vor.u32 %v3703_v33, %v3018_v35 }
  0xe0   :  { %v2429_v62 = vor.u32 %v3555_v52, %v2426_v53  ;;  %v3418_v28 = vld [vmem:[#allocation5 + $0x7f8] sm:$0xf0]  ;;  %v3767_v41 = vld [vmem:[#allocation5 + $0x6cc] sm:$0xf]  ;;  %v3149_v46 = vor.u32 %v3735_v36, %v3146_v39 }
  0xe1   :  { %1956 = vmatpush.bf16.msra.mxu0 %v2493_v59  ;;  %1969 = vmatpush.bf16.msra.mxu1 %v2621_v60  ;;  %v4073_v48 = vadd.f32 %v1742_v44, %v1730_v43  ;;  %v2682_v59 = vld [vmem:[#allocation5 + $0x238] sm:$0xf0]  ;;  %v3651_v60 = vld [vmem:[#allocation5 + $0x32c] sm:$0xf] }
  0xe2   :  { %1982 = vmatpush.bf16.msra.mxu2 %v2749_v61  ;;  %v2810_v61 = vld [vmem:[#allocation5 + $0x338] sm:$0xf0]  ;;  %v2685_v2 = vor.u32 %v3619_v58, %v2682_v59  ;;  %v3799_v43 = vld [vmem:[#allocation5 + $0x7cc] sm:$0xf] }
  0xe3   :  { %1995 = vmatpush.bf16.msra.mxu3 %v2877_v1  ;;  %v2557_v1 = vor.u32 %v3587_v54, %v2554_v57  ;;  %v3402_v44 = vld [vmem:[#allocation5 + $0x7d8] sm:$0xf0]  ;;  %v3699_v49 = vld [vmem:[#allocation5 + $0x4ac] sm:$0xf] }
  0xe4   :  { %v3405_v52 = vor.u32 %v3799_v43, %v3402_v44  ;;  %v3130_v53 = vld [vmem:[#allocation5 + $0x5b8] sm:$0xf0]  ;;  %v3763_v54 = vld [vmem:[#allocation5 + $0x6ac] sm:$0xf] }
  0xe5   :  { %1957 = vmatpush.bf16.msra.mxu0 %v2477_v11  ;;  %1970 = vmatpush.bf16.msra.mxu1 %v2605_v13  ;;  %v2813_v11 = vor.u32 %v3651_v60, %v2810_v61  ;;  %v3647_v13 = vld [vmem:[#allocation5 + $0x30c] sm:$0xf]  ;;  %v1744_v16 = vpop.f32.mrf.mxu3  ;;  %v3386_v57 = vld [vmem:[#allocation5 + $0x7b8] sm:$0xf0]  ;;  %v3261_v60 = vor.u32 %v3763_v54, %v3258_v55  ;;  %v355_v54 = vperm.slane %v4063_v6, 1 }
  0xe6   :  { %1983 = vmatpush.bf16.msra.mxu2 %v2733_v14  ;;  %v1731_v10 = vpop.f32.mrf.mxu2  ;;  %v2794_v14 = vld [vmem:[#allocation5 + $0x318] sm:$0xf0]  ;;  %v3695_v61 = vld [vmem:[#allocation5 + $0x48c] sm:$0xf] }
  0xe7   :  { %1996 = vmatpush.bf16.msra.mxu3 %v2861_v21  ;;  %v3162_v21 = vld [vmem:[#allocation5 + $0x5f8] sm:$0xf0]  ;;  %v3791_v3 = vld [vmem:[#allocation5 + $0x78c] sm:$0xf] }
  0xe8   :  { %v3114_v0 = vld [vmem:[#allocation5 + $0x598] sm:$0xf0]  ;;  %v3691_v10 = vld [vmem:[#allocation5 + $0x46c] sm:$0xf] }
  0xe9   :  { %1958 = vmatpush.bf16.msra.mxu0 %v2461_v29  ;;  %1971 = vmatpush.bf16.msra.mxu1 %v2589_v30  ;;  %v2797_v29 = vor.u32 %v3647_v13, %v2794_v14  ;;  %v3037_v30 = vor.u32 %v3707_v17, %v3034_v18  ;;  %v3723_v12 = vld [vmem:[#allocation5 + $0x56c] sm:$0xf]  ;;  %v3098_v16 = vld [vmem:[#allocation5 + $0x578] sm:$0xf0] }
  0xea   :  { %1984 = vmatpush.bf16.msra.mxu2 %v2717_v31  ;;  %v3165_v31 = vor.u32 %v3739_v19, %v3162_v21  ;;  %v3755_v17 = vld [vmem:[#allocation5 + $0x66c] sm:$0xf]  ;;  %v3226_v18 = vld [vmem:[#allocation5 + $0x678] sm:$0xf0]  ;;  %v3101_v22 = vor.u32 %v3723_v12, %v3098_v16  ;;  %v3812_v16 = vld [vmem:[#allocation8 + $0x30] sm:$0xff] }
  0xeb   :  { %1997 = vmatpush.bf16.msra.mxu3 %v2845_v7  ;;  %v3421_v7 = vor.u32 %v3803_v27, %v3418_v28  ;;  %v3787_v19 = vld [vmem:[#allocation5 + $0x76c] sm:$0xf]  ;;  %v3229_v23 = vor.u32 %v3755_v17, %v3226_v18  ;;  %v3338_v36 = vld [vmem:[#allocation5 + $0x758] sm:$0xf0] }
  0xec   :  { %v3719_v27 = vld [vmem:[#allocation5 + $0x54c] sm:$0xf]  ;;  %v2938_v44 = vld [vmem:[#allocation5 + $0x438] sm:$0xf0] }
  0xed   :  { %1959 = vmatpush.bf16.msra.mxu0 %v2445_v47  ;;  %1972 = vmatpush.bf16.msra.mxu1 %v2573_v50  ;;  %v3277_v47 = vor.u32 %v3767_v41, %v3274_v42  ;;  %v3002_v50 = vld [vmem:[#allocation5 + $0x4b8] sm:$0xf0]  ;;  %v3783_v35 = vld [vmem:[#allocation5 + $0x74c] sm:$0xf] }
  0xee   :  { %1985 = vmatpush.bf16.msra.mxu2 %v2701_v51  ;;  %v3731_v51 = vld [vmem:[#allocation5 + $0x5ac] sm:$0xf]  ;;  %v3005_v58 = vor.u32 %v3699_v49, %v3002_v50  ;;  %v3066_v49 = vld [vmem:[#allocation5 + $0x538] sm:$0xf0] }
  0xef   :  { %1998 = vmatpush.bf16.msra.mxu3 %v2829_v56  ;;  %v3795_v56 = vld [vmem:[#allocation5 + $0x7ac] sm:$0xf]  ;;  %v3133_v59 = vor.u32 %v3731_v51, %v3130_v53  ;;  %v3194_v51 = vld [vmem:[#allocation5 + $0x638] sm:$0xf0] }
  0xf0   :  { %v3389_v63 = vor.u32 %v3795_v56, %v3386_v57  ;;  %v3683_v43 = vld [vmem:[#allocation5 + $0x42c] sm:$0xf]  ;;  %v3322_v53 = vld [vmem:[#allocation5 + $0x738] sm:$0xf0] }
  0xf1   :  { %1960 = vmatpush.bf16.msra.mxu0 %v2429_v62  ;;  %1973 = vmatpush.bf16.msra.mxu1 %v2557_v1  ;;  %v2986_v62 = vld [vmem:[#allocation5 + $0x498] sm:$0xf0]  ;;  %v3759_v1 = vld [vmem:[#allocation5 + $0x68c] sm:$0xf]  ;;  %v2941_v55 = vor.u32 %v3683_v43, %v2938_v44 }
  0xf2   :  { %1986 = vmatpush.bf16.msra.mxu2 %v2685_v2  ;;  %v3242_v2 = vld [vmem:[#allocation5 + $0x698] sm:$0xf0]  ;;  %v3747_v50 = vld [vmem:[#allocation5 + $0x62c] sm:$0xf] }
  0xf3   :  { %1999 = vmatpush.bf16.msra.mxu3 %v2813_v11  ;;  %v3245_v5 = vor.u32 %v3759_v1, %v3242_v2  ;;  %v2970_v11 = vld [vmem:[#allocation5 + $0x478] sm:$0xf0]  ;;  %v3197_v57 = vor.u32 %v3747_v50, %v3194_v51  ;;  %v3775_v2 = vld [vmem:[#allocation5 + $0x70c] sm:$0xf] }
  0xf4   :  { %v2973_v21 = vor.u32 %v3691_v10, %v2970_v11  ;;  %v3813_v11 = vld [vmem:[#allocation8 + $0x38] sm:$0xff] }
  0xf5   :  { %1961 = vmatpush.bf16.msra.mxu0 %v2413_v20  ;;  %1974 = vmatpush.bf16.msra.mxu1 %v2541_v24  ;;  %v4079_v4 = vpop.f32.mrf.mxu0  ;;  %v4081_v13 = vpop.f32.mrf.mxu1  ;;  %v3354_v20 = vld [vmem:[#allocation5 + $0x778] sm:$0xf0]  ;;  %v3687_v24 = vld [vmem:[#allocation5 + $0x44c] sm:$0xf] }
  0xf6   :  { %1987 = vmatpush.bf16.msra.mxu2 %v2669_v26  ;;  %v2954_v26 = vld [vmem:[#allocation5 + $0x458] sm:$0xf0] }
  0xf7   :  { %2000 = vmatpush.bf16.msra.mxu3 %v2797_v29  ;;  %v3357_v29 = vor.u32 %v3787_v19, %v3354_v20  ;;  %v3821_v12 = vld [vmem:[#allocation8 + $0x78] sm:$0xff]  ;;  %v3819_v20 = vld [vmem:[#allocation8 + $0x68] sm:$0xff] }
  0xf8   :  { %1962 = vmatmul.bf16.vlgmr.msra.gmra.mxu0 %v4029_v9  ;;  %1975 = vmatmul.bf16.vlgmr.msra.gmra.mxu1 %v4036_v25  ;;  %v3370_v9 = vld [vmem:[#allocation5 + $0x798] sm:$0xf0] }
  0xf9   :  { %2006 = vmatpush.bf16.msrb.mxu0 %v3037_v30  ;;  %2019 = vmatpush.bf16.msrb.mxu1 %v3165_v31  ;;  %v3373_v14 = vor.u32 %v3791_v3, %v3370_v9  ;;  %v3082_v30 = vld [vmem:[#allocation5 + $0x558] sm:$0xf0]  ;;  %v3751_v31 = vld [vmem:[#allocation5 + $0x64c] sm:$0xf]  ;;  %v1756_v9 = vadd.f32 %v4079_v4, %v355_v54  ;;  %v3820_v4 = vld [vmem:[#allocation8 + $0x70] sm:$0xff] }
  0xfa   :  { %2032 = vmatpush.bf16.msrb.mxu2 %v3293_v32  ;;  %2001 = vmatmul.bf16.vlgmr.msra.gmra.mxu3 %v4031_v15  ;;  %v2989_v15 = vor.u32 %v3695_v61, %v2986_v62  ;;  %v3210_v32 = vld [vmem:[#allocation5 + $0x658] sm:$0xf0]  ;;  %v3085_v41 = vor.u32 %v3719_v27, %v3082_v30  ;;  %v3808_v30 = vld [vmem:[#allocation8 + $0x10] sm:$0xff] }
  0xfb   :  { %2045 = vmatpush.bf16.msrb.mxu3 %v3421_v7  ;;  %1988 = vmatmul.bf16.vlgmr.msra.gmra.mxu2 %v4027_v8  ;;  %v3727_v8 = vld [vmem:[#allocation5 + $0x58c] sm:$0xf]  ;;  %v2957_v7 = vor.u32 %v3687_v24, %v2954_v26  ;;  %v3213_v42 = vor.u32 %v3751_v31, %v3210_v32  ;;  %v3306_v3 = vld [vmem:[#allocation5 + $0x718] sm:$0xf0]  ;;  %v3828_v26 = vld [vmem:[#allocation8 + $0xb0] sm:$0xff] }
  0xfc   :  { %v3117_v25 = vor.u32 %v3727_v8, %v3114_v0  ;;  %v3050_v8 = vld [vmem:[#allocation5 + $0x518] sm:$0xf0]  ;;  %v3309_v10 = vor.u32 %v3775_v2, %v3306_v3  ;;  %v3824_v54 = vld [vmem:[#allocation8 + $0x90] sm:$0xff] }
  0xfd   :  { %2007 = vmatpush.bf16.msrb.mxu0 %v3021_v45  ;;  %2020 = vmatpush.bf16.msrb.mxu1 %v3149_v46  ;;  %v4085_v33 = vpop.f32.mrf.mxu3  ;;  %v1757_v39 = vpop.f32.mrf.mxu0  ;;  %v3715_v45 = vld [vmem:[#allocation5 + $0x52c] sm:$0xf]  ;;  %v3178_v0 = vld [vmem:[#allocation5 + $0x618] sm:$0xf0] }
  0xfe   :  { %2033 = vmatpush.bf16.msrb.mxu2 %v3277_v47  ;;  %v4083_v28 = vpop.f32.mrf.mxu2  ;;  %v1770_v46 = vpop.f32.mrf.mxu1  ;;  %v3341_v47 = vor.u32 %v3783_v35, %v3338_v36  ;;  %v3069_v56 = vor.u32 %v3715_v45, %v3066_v49  ;;  %v3829_v17 = vld [vmem:[#allocation8 + $0xb8] sm:$0xff]  ;;  %v3816_v35 = vld [vmem:[#allocation8 + $0x50] sm:$0xff]  ;;  %v3807_v39 = vld [vmem:[#allocation8 + $0x8] sm:$0xff] }
  0xff   :  { %2046 = vmatpush.bf16.msrb.mxu3 %v3405_v52  ;;  %v3779_v52 = vld [vmem:[#allocation5 + $0x72c] sm:$0xf]  ;;  %v3806_v46 = vld [vmem:[#allocation8] sm:$0xff] }
 0x100   :  { %v3325_v62 = vor.u32 %v3779_v52, %v3322_v53  ;;  %v3814_v49 = vld [vmem:[#allocation8 + $0x40] sm:$0xff] }
 0x101   :  { %2008 = vmatpush.bf16.msrb.mxu0 %v3005_v58  ;;  %2021 = vmatpush.bf16.msrb.mxu1 %v3133_v59  ;;  %v3679_v58 = vld [vmem:[#allocation5 + $0x40c] sm:$0xf]  ;;  %v2922_v59 = vld [vmem:[#allocation5 + $0x418] sm:$0xf0] }
 0x102   :  { %2034 = vmatpush.bf16.msrb.mxu2 %v3261_v60  ;;  %v3711_v60 = vld [vmem:[#allocation5 + $0x50c] sm:$0xf] }
 0x103   :  { %2047 = vmatpush.bf16.msrb.mxu3 %v3389_v63  ;;  %v3743_v63 = vld [vmem:[#allocation5 + $0x60c] sm:$0xf] }
 0x105   :  { %2009 = vmatpush.bf16.msrb.mxu0 %v2989_v15  ;;  %2022 = vmatpush.bf16.msrb.mxu1 %v3117_v25  ;;  %v1796_v1 = vpop.f32.mrf.mxu3  ;;  %v2925_v15 = vor.u32 %v3679_v58, %v2922_v59  ;;  %v3053_v25 = vor.u32 %v3711_v60, %v3050_v8  ;;  %v3822_v60 = vld [vmem:[#allocation8 + $0x80] sm:$0xff] }
 0x106   :  { %2035 = vmatpush.bf16.msrb.mxu2 %v3245_v5  ;;  %v1783_v61 = vpop.f32.mrf.mxu2  ;;  %v3181_v5 = vor.u32 %v3743_v63, %v3178_v0 }
 0x107   :  { %2048 = vmatpush.bf16.msrb.mxu3 %v3373_v14  ;;  %v1769_v14 = vadd.f32 %v4081_v13, %v1756_v9  ;;  %v3811_v13 = vld [vmem:[#allocation8 + $0x28] sm:$0xff] }
 0x109   :  { %2010 = vmatpush.bf16.msrb.mxu0 %v2973_v21  ;;  %2023 = vmatpush.bf16.msrb.mxu1 %v3101_v22  ;;  %v1782_v18 = vadd.f32 %v4083_v28, %v1769_v14  ;;  %v3810_v21 = vld [vmem:[#allocation8 + $0x20] sm:$0xff] }
 0x10a   :  { %2036 = vmatpush.bf16.msrb.mxu2 %v3229_v23 }
 0x10b   :  { %2049 = vmatpush.bf16.msrb.mxu3 %v3357_v29  ;;  %v1795_v19 = vadd.f32 %v4085_v33, %v1782_v18  ;;  %v3827_v29 = vld [vmem:[#allocation8 + $0xa8] sm:$0xff]  ;;  %v3826_v33 = vld [vmem:[#allocation8 + $0xa0] sm:$0xff] }
 0x10d   :  { %2011 = vmatpush.bf16.msrb.mxu0 %v2957_v7  ;;  %2024 = vmatpush.bf16.msrb.mxu1 %v3085_v41  ;;  %v3825_v41 = vld [vmem:[#allocation8 + $0x98] sm:$0xff] }
 0x10e   :  { %2037 = vmatpush.bf16.msrb.mxu2 %v3213_v42  ;;  %v3815_v42 = vld [vmem:[#allocation8 + $0x48] sm:$0xff] }
 0x10f   :  { %2050 = vmatpush.bf16.msrb.mxu3 %v3341_v47  ;;  %v2058_v47 = vmax.f32 %v4073_v48, 0.0  ;;  %v356_v48 = vperm.slane %v4063_v6, 2 }
 0x111   :  { %2012 = vmatpush.bf16.msrb.mxu0 %v2941_v55  ;;  %2025 = vmatpush.bf16.msrb.mxu1 %v3069_v56  ;;  %v2062_v51 = vpack.c.bf16 %v2058_v47, %v2058_v47 }
 0x112   :  { %2038 = vmatpush.bf16.msrb.mxu2 %v3197_v57  ;;  %v3823_v57 = vld [vmem:[#allocation8 + $0x88] sm:$0xff] }
 0x113   :  { %2051 = vmatpush.bf16.msrb.mxu3 %v3325_v62 }
 0x115   :  { %2013 = vmatpush.bf16.msrb.mxu0 %v2925_v15  ;;  %2026 = vmatpush.bf16.msrb.mxu1 %v3053_v25  ;;  %v1807_v22 = vpop.f32.mrf.mxu0  ;;  %v1820_v24 = vpop.f32.mrf.mxu1 }
 0x116   :  { %2039 = vmatpush.bf16.msrb.mxu2 %v3181_v5  ;;  %v1808_v23 = vadd.f32 %v1807_v22, %v1795_v19  ;;  %v3833_v22 = vld [vmem:[#allocation8 + $0xd8] sm:$0xff] }
 0x117   :  { %2052 = vmatpush.bf16.msrb.mxu3 %v3309_v10 }
 0x118   :  { %2014 = vmatmul.bf16.vlgmr.msrb.gmra.mxu0 %v4041_v37  ;;  %2027 = vmatmul.bf16.vlgmr.msrb.gmra.mxu1 %v4045_v40  ;;  %v3818_v37 = vld [vmem:[#allocation8 + $0x60] sm:$0xff]  ;;  %v1821_v40 = vadd.f32 %v1820_v24, %v1808_v23 }
 0x119   :  { %2326 = vmatpush.bf16.msra.mxu0 %v3813_v11  ;;  %2339 = vmatpush.bf16.msra.mxu1 %v3821_v12  ;;  %v3837_v11 = vld [vmem:[#allocation8 + $0xf8] sm:$0xff] }
 0x11a   :  { %2040 = vmatmul.bf16.vlgmr.msrb.gmra.mxu2 %v4039_v34  ;;  %2053 = vmatmul.bf16.vlgmr.msrb.gmra.mxu3 %v4043_v38  ;;  %v3809_v34 = vld [vmem:[#allocation8 + $0x18] sm:$0xff] }
 0x11b   :  { %2352 = vmatpush.bf16.msra.mxu2 %v3829_v17  ;;  %v3817_v38 = vld [vmem:[#allocation8 + $0x58] sm:$0xff]  ;;  %2365 = vmatpush.bf16.msra.mxu3 %v3837_v11 }
 0x11d   :  { %2327 = vmatpush.bf16.msra.mxu0 %v3812_v16  ;;  %2340 = vmatpush.bf16.msra.mxu1 %v3820_v4  ;;  %v1846_v28 = vpop.f32.mrf.mxu3  ;;  %v1809_v32 = vpop.f32.mrf.mxu0  ;;  %v3836_v16 = vld [vmem:[#allocation8 + $0xf0] sm:$0xff] }
 0x11e   :  { %v1833_v27 = vpop.f32.mrf.mxu2  ;;  %v1822_v36 = vpop.f32.mrf.mxu1 }
 0x11f   :  { %2353 = vmatpush.bf16.msra.mxu2 %v3828_v26  ;;  %v1834_v31 = vadd.f32 %v1833_v27, %v1821_v40  ;;  %2366 = vmatpush.bf16.msra.mxu3 %v3836_v16  ;;  %v3831_v26 = vld [vmem:[#allocation8 + $0xc8] sm:$0xff]  ;;  %v3830_v27 = vld [vmem:[#allocation8 + $0xc0] sm:$0xff] }
 0x121   :  { %2328 = vmatpush.bf16.msra.mxu0 %v3811_v13  ;;  %2341 = vmatpush.bf16.msra.mxu1 %v3819_v20  ;;  %v1847_v7 = vadd.f32 %v1846_v28, %v1834_v31  ;;  %v3835_v13 = vld [vmem:[#allocation8 + $0xe8] sm:$0xff] }
 0x123   :  { %2354 = vmatpush.bf16.msra.mxu2 %v3827_v29  ;;  %v2059_v45 = vmax.f32 %v1847_v7, 0.0  ;;  %2367 = vmatpush.bf16.msra.mxu3 %v3835_v13  ;;  %v357_v29 = vperm.slane %v4063_v6, 3 }
 0x125   :  { %2329 = vmatpush.bf16.msra.mxu0 %v3810_v21  ;;  %2342 = vmatpush.bf16.msra.mxu1 %v3818_v37  ;;  %v1848_v44 = vpop.f32.mrf.mxu3  ;;  %v2063_v50 = vpack.c.bf16 %v2059_v45, %v2059_v45  ;;  %v3834_v21 = vld [vmem:[#allocation8 + $0xe0] sm:$0xff]  ;;  %v3832_v37 = vld [vmem:[#allocation8 + $0xd0] sm:$0xff] }
 0x126   :  { %v1835_v43 = vpop.f32.mrf.mxu2 }
 0x127   :  { %2355 = vmatpush.bf16.msra.mxu2 %v3826_v33  ;;  %2368 = vmatpush.bf16.msra.mxu3 %v3834_v21 }
 0x129   :  { %2330 = vmatpush.bf16.msra.mxu0 %v3809_v34  ;;  %2343 = vmatpush.bf16.msra.mxu1 %v3817_v38 }
 0x12b   :  { %2356 = vmatpush.bf16.msra.mxu2 %v3825_v41  ;;  %2369 = vmatpush.bf16.msra.mxu3 %v3833_v22 }
 0x12d   :  { %2331 = vmatpush.bf16.msra.mxu0 %v3808_v30  ;;  %2344 = vmatpush.bf16.msra.mxu1 %v3816_v35 }
 0x12f   :  { %2357 = vmatpush.bf16.msra.mxu2 %v3824_v54  ;;  %2370 = vmatpush.bf16.msra.mxu3 %v3832_v37 }
 0x131   :  { %2332 = vmatpush.bf16.msra.mxu0 %v3807_v39  ;;  %2345 = vmatpush.bf16.msra.mxu1 %v3815_v42 }
 0x133   :  { %2358 = vmatpush.bf16.msra.mxu2 %v3823_v57  ;;  %2371 = vmatpush.bf16.msra.mxu3 %v3831_v26 }
 0x135   :  { %2333 = vmatpush.bf16.msra.mxu0 %v3806_v46  ;;  %2346 = vmatpush.bf16.msra.mxu1 %v3814_v49  ;;  %v1859_v52 = vpop.f32.mrf.mxu0  ;;  %v1872_v53 = vpop.f32.mrf.mxu1 }
 0x136   :  { %v1860_v8 = vadd.f32 %v1859_v52, %v356_v48 }
 0x137   :  { %2359 = vmatpush.bf16.msra.mxu2 %v3822_v60  ;;  %2372 = vmatpush.bf16.msra.mxu3 %v3830_v27 }
 0x138   :  { %2334 = vmatmul.bf16.vlgmr.msra.gmra.mxu0 %v2062_v51  ;;  %2347 = vmatmul.bf16.vlgmr.msra.gmra.mxu1 %v2063_v50  ;;  %v1873_v63 = vadd.f32 %v1872_v53, %v1860_v8  ;;  %v3847_v53 = vld [vmem:[%s4109_s4] ss:$0 sm:$0xff] }
 0x13d   :  { %v1898_v56 = vpop.f32.mrf.mxu3  ;;  %v1861_v58 = vpop.f32.mrf.mxu0 }
 0x13e   :  { %v1885_v55 = vpop.f32.mrf.mxu2  ;;  %v1874_v59 = vpop.f32.mrf.mxu1 }
 0x13f   :  { %v1886_v0 = vadd.f32 %v1885_v55, %v1873_v63 }
 0x141   :  { %v1899_v1 = vadd.f32 %v1898_v56, %v1886_v0 }
 0x145   :  { %v1900_v62 = vpop.f32.mrf.mxu3 }
 0x146   :  { %v1887_v61 = vpop.f32.mrf.mxu2 }
 0x155   :  { %v1911_v2 = vpop.f32.mrf.mxu0  ;;  %v1924_v9 = vpop.f32.mrf.mxu1 }
 0x156   :  { %v1912_v3 = vadd.f32 %v1911_v2, %v1899_v1 }
 0x158   :  { %v1925_v15 = vadd.f32 %v1924_v9, %v1912_v3 }
 0x15d   :  { %v1950_v10 = vpop.f32.mrf.mxu3  ;;  %v1913_v14 = vpop.f32.mrf.mxu0 }
 0x15e   :  { %v1937_v25 = vpop.f32.mrf.mxu2  ;;  %v1926_v17 = vpop.f32.mrf.mxu1 }
 0x15f   :  { %v1938_v5 = vadd.f32 %v1937_v25, %v1925_v15 }
 0x161   :  { %v1951_v12 = vadd.f32 %v1950_v10, %v1938_v5 }
 0x163   :  { %v2060_v4 = vmax.f32 %v1951_v12, 0.0 }
 0x165   :  { %v2064_v18 = vpack.c.bf16 %v2060_v4, %v2060_v4  ;;  %v1952_v20 = vpop.f32.mrf.mxu3 }
 0x166   :  { %v1939_v19 = vpop.f32.mrf.mxu2 }
 0x167   :  { %2360 = vmatmul.bf16.vlgmr.msra.gmra.mxu2 %v2064_v18 }
 0x175   :  { %v1963_v23 = vpop.f32.mrf.mxu0  ;;  %v1976_v24 = vpop.f32.mrf.mxu1 }
 0x176   :  { %v1964_v32 = vadd.f32 %v1963_v23, %v357_v29 }
 0x178   :  { %v1977_v33 = vadd.f32 %v1976_v24, %v1964_v32 }
 0x17d   :  { %v2002_v40 = vpop.f32.mrf.mxu3  ;;  %v1965_v38 = vpop.f32.mrf.mxu0 }
 0x17e   :  { %v1989_v34 = vpop.f32.mrf.mxu2  ;;  %v1978_v28 = vpop.f32.mrf.mxu1 }
 0x17f   :  { %v1990_v35 = vadd.f32 %v1989_v34, %v1977_v33 }
 0x181   :  { %v2003_v36 = vadd.f32 %v2002_v40, %v1990_v35 }
 0x185   :  { %v2004_v31 = vpop.f32.mrf.mxu3 }
 0x186   :  { %v1991_v30 = vpop.f32.mrf.mxu2 }
 0x195   :  { %v2015_v7 = vpop.f32.mrf.mxu0  ;;  %v2028_v39 = vpop.f32.mrf.mxu1 }
 0x196   :  { %v2016_v41 = vadd.f32 %v2015_v7, %v2003_v36 }
 0x198   :  { %v2029_v42 = vadd.f32 %v2028_v39, %v2016_v41 }
 0x19d   :  { %v2041_v43 = vpop.f32.mrf.mxu2  ;;  %v2054_v45 = vpop.f32.mrf.mxu3 }
 0x19e   :  { %v2042_v44 = vadd.f32 %v2041_v43, %v2029_v42  ;;  %v2017_v46 = vpop.f32.mrf.mxu0  ;;  %v2030_v47 = vpop.f32.mrf.mxu1 }
 0x1a0   :  { %v2055_v49 = vadd.f32 %v2054_v45, %v2042_v44 }
 0x1a2   :  { %v2061_v50 = vmax.f32 %v2055_v49, 0.0 }
 0x1a4   :  { %v2065_v51 = vpack.c.bf16 %v2061_v50, %v2061_v50 }
 0x1a5   :  { %v2043_v52 = vpop.f32.mrf.mxu2  ;;  %v2056_v6 = vpop.f32.mrf.mxu3 }
 0x1a6   :  { %2373 = vmatmul.bf16.vlgmr.msra.gmra.mxu3 %v2065_v51 }
 0x1b5   :  { %v2335_v54 = vpop.f32.mrf.mxu0  ;;  %v2348_v56 = vpop.f32.mrf.mxu1 }
 0x1b6   :  { %v2336_v55 = vadd.f32 %v3847_v53, %v2335_v54 }
 0x1b8   :  { %v2349_v57 = vadd.f32 %v2348_v56, %v2336_v55 }
 0x1bd   :  { %v2337_v58 = vpop.f32.mrf.mxu0  ;;  %v2350_v59 = vpop.f32.mrf.mxu1 }
 0x1ea   :  { %v2361_v60 = vpop.f32.mrf.mxu2 }
 0x1eb   :  { %v2362_v61 = vadd.f32 %v2361_v60, %v2349_v57 }
 0x1f2   :  { %v2363_v48 = vpop.f32.mrf.mxu2 }
 0x229   :  { %v2374_v62 = vpop.f32.mrf.mxu3 }
 0x22a   :  { %v2375_v8 = vadd.f32 %v2374_v62, %v2362_v61 }
 0x22c   :  { %2378 = vst [vmem:[#allocation10] sm:$0xff] %v2375_v8 }
 0x22d   :  { %2389 = dma.vmem_to_hbm [thread:$0]  %s2385_s16, 128, %s2387_s19, [#allocation4]  }
 0x231   :  { %v2376_v63 = vpop.f32.mrf.mxu3 }
 0x232   :  { %3974 = dma.done.wait [#allocation4], 128  }
 0x233   :  { %3975 = vsyncadd [#allocation4], 4294967168 }
 0x234   :  { %2394 = vsyncpa [#allocation3], 1 }
 0x235   :  { %2395 = vsyncpa [#allocation6], 1 }
 0x236   :  { %2396 = vsyncpa [#allocation9], 1 }
 0x237   :  { %2397 = vsyncpa [#allocation4], 1 }

</bundles_post_ra>
